<compile_context>
chip_gen: v6e
topology: v6e:2x2x1
jax: 0.10.0
libtpu: 0.0.40
codegen_flags: <defaults>
</compile_context>

<pallas_src>
import math
import functools

import jax
import jax.numpy as jnp
from jax import lax
from jax.experimental import pallas as pl
from jax.experimental.pallas import tpu as pltpu


def attention_block_kernel(x_ref, params_ref, sg_ref, wqkv_ref, wproj_ref,
                           out_ref, xn_ref, h_ref, *, num_heads, eps, tb):
    C = x_ref.shape[1]
    L = x_ref.shape[2]
    H = num_heads
    Dh = C // H

    gamma = params_ref[0]          # (C, 1) f32
    beta = params_ref[1]           # (C, 1) f32
    bproj = params_ref[2]          # (C, 1) f32
    sg = sg_ref[...]               # (C, C) f32, block-diag "same group" * 1/(Cg*L)

    # ---- GroupNorm (single pass) per row; lane-concatenate bf16 rows ------
    # NOTE: for tb > 2 convert these static row loops to lax.fori_loop(...,
    # unroll=small) to bound vreg live ranges (static unroll would spill).
    for b in range(tb):
        x = x_ref[b]                                        # (C, L) f32
        ch_sum = jnp.sum(x, axis=1, keepdims=True)          # (C, 1)
        ch_sq = jnp.sum(x * x, axis=1, keepdims=True)       # (C, 1)
        stats = jnp.concatenate([ch_sum, ch_sq], axis=1)    # (C, 2)
        g = jnp.dot(sg, stats, preferred_element_type=jnp.float32)  # (C, 2)
        mean = g[:, 0:1]                                    # E[x]   (per group)
        var = g[:, 1:2] - mean * mean                       # E[x^2] - E[x]^2
        rstd = lax.rsqrt(var + eps)
        scale = rstd * gamma                                # fold affine into one FMA
        shift = beta - mean * scale
        xn_ref[:, b * L:(b + 1) * L] = (x * scale + shift).astype(jnp.bfloat16)

    # ---- qkv 1x1 conv: ONE (3C, C) @ (C, tb*L) bf16 MXU matmul ------------
    qkv = jnp.dot(wqkv_ref[...], xn_ref[...],
                  preferred_element_type=jnp.float32)       # (3C, tb*L) f32
    qkv_b16 = qkv.astype(jnp.bfloat16)

    # ---- per-row, per-head attention (scores cannot be lane-batched) ------
    for b in range(tb):
        lo = b * L
        for hh in range(H):
            base = hh * 3 * Dh                              # torch per-head q|k|v split
            q = qkv_b16[base:base + Dh, lo:lo + L]          # (Dh, L), already /sqrt(Dh)
            k = qkv_b16[base + Dh:base + 2 * Dh, lo:lo + L]
            v = qkv_b16[base + 2 * Dh:base + 3 * Dh, lo:lo + L]

            # Transposed scores: sT[s, t] = sum_c k[c, s] * q[c, t]
            # (trans_a form: contraction on the sublane axis -> MXU-native.)
            sT = lax.dot_general(k, q, (((0,), (0,)), ((), ())),
                                 preferred_element_type=jnp.float32)  # (L_s, L_t)
            sT = sT - jnp.max(sT, axis=0, keepdims=True)
            p = jnp.exp(sT)                                 # unnormalized probs
            rs = jnp.sum(p, axis=0, keepdims=True)          # (1, L_t)

            # PV: h[c, t] = sum_s v[c, s] * p[s, t]; defer softmax normalization
            # to the (Dh, L) head output using the EUP approximate reciprocal.
            hv = jnp.dot(v, p.astype(jnp.bfloat16),
                         preferred_element_type=jnp.float32)          # (Dh, L_t)
            h_ref[hh * Dh:(hh + 1) * Dh, lo:lo + L] = (
                hv * pl.reciprocal(rs, approx=True)).astype(jnp.bfloat16)

    # ---- proj 1x1 conv: ONE (C, C) @ (C, tb*L) matmul; bias + residual ----
    out = jnp.dot(wproj_ref[...], h_ref[...],
                  preferred_element_type=jnp.float32)       # (C, tb*L) f32
    for b in range(tb):
        out_ref[b] = out[:, b * L:(b + 1) * L] + bproj + x_ref[b]


def attention_block(x, gamma, beta, w_qkv, w_proj, b_proj, *,
                    num_heads=1, num_groups=32, eps=1e-5, tb=1):
    B, C, L = x.shape
    assert C % num_heads == 0 and C % num_groups == 0
    assert B % tb == 0
    Dh = C // num_heads
    Cg = C // num_groups

    # Merge the three per-channel vectors into one input (fewer DMA descriptors).
    params = jnp.stack([gamma, beta, b_proj]).reshape(3, C, 1).astype(jnp.float32)

    # Block-diagonal "same group" aggregation matrix, pre-scaled by 1/(Cg*L)
    # (host-side; avoids rebuilding it from iota/compare every grid step).
    rg = jnp.arange(C) // Cg
    same_group = (rg[:, None] == rg[None, :]).astype(jnp.float32) / float(Cg * L)

    # Fold the attention scale 1/sqrt(Dh) into the q rows of w_qkv, then cast
    # both matmul weights to bf16 once, outside the kernel.
    q_rows = (jnp.arange(3 * C) % (3 * Dh)) < Dh
    row_scale = jnp.where(q_rows, 1.0 / math.sqrt(Dh), 1.0).astype(jnp.float32)
    w_qkv_b = (w_qkv * row_scale[:, None]).astype(jnp.bfloat16)
    w_proj_b = w_proj.astype(jnp.bfloat16)

    kern = functools.partial(attention_block_kernel, num_heads=num_heads,
                             eps=eps, tb=tb)
    return pl.pallas_call(
        kern,
        out_shape=jax.ShapeDtypeStruct((B, C, L), x.dtype),
        grid_spec=pltpu.PrefetchScalarGridSpec(
            num_scalar_prefetch=0,
            grid=(B // tb,),
            in_specs=[
                pl.BlockSpec((tb, C, L), lambda b: (b, 0, 0)),     # x rows
                pl.BlockSpec((3, C, 1), lambda b: (0, 0, 0)),      # gamma|beta|bproj
                pl.BlockSpec((C, C), lambda b: (0, 0)),            # same-group matrix
                pl.BlockSpec((3 * C, C), lambda b: (0, 0)),        # qkv weight (bf16)
                pl.BlockSpec((C, C), lambda b: (0, 0)),            # proj weight (bf16)
            ],
            out_specs=pl.BlockSpec((tb, C, L), lambda b: (b, 0, 0)),
            scratch_shapes=[
                pltpu.VMEM((C, tb * L), jnp.bfloat16),   # normalized-x lane-concat slab
                pltpu.VMEM((C, tb * L), jnp.bfloat16),   # head-output lane-concat slab
            ]),
        compiler_params=pltpu.CompilerParams(
            dimension_semantics=("parallel",)),
    )(x, params, same_group, w_qkv_b, w_proj_b)


def reference(x, gamma, beta, w_qkv, w_proj, b_proj, *,
              num_heads, num_groups=32, eps=1e-5):
    """Pure-JAX f32 mirror of the PyTorch forward, for verification."""
    B, C, L = x.shape
    xg = x.reshape(B, num_groups, C // num_groups, L)
    mean = xg.mean(axis=(2, 3), keepdims=True)
    var = ((xg - mean) ** 2).mean(axis=(2, 3), keepdims=True)
    xn = ((xg - mean) * lax.rsqrt(var + eps)).reshape(B, C, L)
    xn = xn * gamma.reshape(1, C, 1) + beta.reshape(1, C, 1)

    qkv = jnp.einsum('oc,bcl->bol', w_qkv, xn)                    # (B, 3C, L)
    H, Dh = num_heads, C // num_heads
    qkv = qkv.reshape(B * H, 3 * Dh, L)
    q, k, v = qkv[:, :Dh], qkv[:, Dh:2 * Dh], qkv[:, 2 * Dh:]
    scale = 1.0 / math.sqrt(math.sqrt(Dh))
    attn = jnp.einsum('bct,bcs->bts', q * scale, k * scale)
    attn = jax.nn.softmax(attn, axis=-1)
    h = jnp.einsum('bts,bcs->bct', attn, v).reshape(B, C, L)
    out = jnp.einsum('oc,bcl->bol', w_proj, h) + b_proj.reshape(1, C, 1)
    return out + x


if __name__ == "__main__":
    B, C, L = 2, 64, 128
    num_heads = 2
    num_groups = 32

    key = jax.random.PRNGKey(0)
    kx, kg, kb, kq, kp, kpb = jax.random.split(key, 6)

    x = jax.random.normal(kx, (B, C, L), dtype=jnp.float32)
    # Deterministic, non-trivial parameter init (synthetic; no checkpoint load).
    gamma = 1.0 + 0.1 * jax.random.normal(kg, (C,), dtype=jnp.float32)
    beta = 0.1 * jax.random.normal(kb, (C,), dtype=jnp.float32)
    w_qkv = jax.random.normal(kq, (3 * C, C), dtype=jnp.float32) / math.sqrt(C)
    w_proj = jax.random.normal(kp, (C, C), dtype=jnp.float32) / math.sqrt(C)
    b_proj = 0.05 * jax.random.normal(kpb, (C,), dtype=jnp.float32)

    ref = reference(x, gamma, beta, w_qkv, w_proj, b_proj,
                    num_heads=num_heads, num_groups=num_groups)
    ref = jax.block_until_ready(ref)

    # tb=1: grid=(2,) parallel steps -> both v7x TensorCores get work.
    # tb=2: grid=(1,) fat step with lane-concatenated qkv/proj matmuls
    #       (the right choice on single-TC v5e/v6e at this tiny B).
    for tb in (1, 2):
        out = attention_block(x, gamma, beta, w_qkv, w_proj, b_proj,
                              num_heads=num_heads, num_groups=num_groups, tb=tb)
        out = jax.block_until_ready(out)
        assert out.shape == (B, C, L)
        # bf16 MXU operands + approx reciprocal vs. an f32 reference: tol ~1e-1.
        max_err = float(jnp.max(jnp.abs(out - ref)))
        assert jnp.allclose(out, ref, atol=1e-1, rtol=1e-1), (tb, max_err)

    print("KERNEL_OK")
</pallas_src>

<mosaic_0001>
module attributes {stable_mosaic.version = 11 : i64} {
  func.func @attention_block_kernel(%arg0: i32, %arg1: memref<1x64x128xf32, #tpu.memory_space<vmem>>, %arg2: memref<3x64x1xf32, #tpu.memory_space<vmem>>, %arg3: memref<64x64xf32, #tpu.memory_space<vmem>>, %arg4: memref<192x64xbf16, #tpu.memory_space<vmem>>, %arg5: memref<64x64xbf16, #tpu.memory_space<vmem>>, %arg6: memref<1x64x128xf32, #tpu.memory_space<vmem>>, %arg7: memref<64x128xbf16, #tpu.memory_space<vmem>>, %arg8: memref<64x128xbf16, #tpu.memory_space<vmem>>) attributes {dimension_semantics = [#tpu.dimension_semantics<parallel>], iteration_bounds = array<i64: 2>, scalar_prefetch = 0 : i64, scratch_operands = 2 : i64, tpu.core_type = #tpu.core_type<tc>, window_params = [{transform_indices = @transform_0, window_bounds = array<i64: 1, 64, 128>}, {pipeline_mode = #tpu.pipeline_mode<synchronous>, transform_indices = @transform_1, window_bounds = array<i64: 3, 64, 1>}, {pipeline_mode = #tpu.pipeline_mode<synchronous>, transform_indices = @transform_2, window_bounds = array<i64: 64, 64>}, {pipeline_mode = #tpu.pipeline_mode<synchronous>, transform_indices = @transform_3, window_bounds = array<i64: 192, 64>}, {pipeline_mode = #tpu.pipeline_mode<synchronous>, transform_indices = @transform_4, window_bounds = array<i64: 64, 64>}, {transform_indices = @transform_5, window_bounds = array<i64: 1, 64, 128>}]} {
    %c0 = arith.constant 0 : index
    %c0_0 = arith.constant 0 : index
    %c0_1 = arith.constant 0 : index
    %0 = vector.load %arg2[%c0, %c0_0, %c0_1] : memref<3x64x1xf32, #tpu.memory_space<vmem>>, vector<1x64x1xf32>
    %1 = vector.shape_cast %0 : vector<1x64x1xf32> to vector<64x1xf32>
    %c1 = arith.constant 1 : index
    %c0_2 = arith.constant 0 : index
    %c0_3 = arith.constant 0 : index
    %2 = vector.load %arg2[%c1, %c0_2, %c0_3] : memref<3x64x1xf32, #tpu.memory_space<vmem>>, vector<1x64x1xf32>
    %3 = vector.shape_cast %2 : vector<1x64x1xf32> to vector<64x1xf32>
    %c2 = arith.constant 2 : index
    %c0_4 = arith.constant 0 : index
    %c0_5 = arith.constant 0 : index
    %4 = vector.load %arg2[%c2, %c0_4, %c0_5] : memref<3x64x1xf32, #tpu.memory_space<vmem>>, vector<1x64x1xf32>
    %5 = vector.shape_cast %4 : vector<1x64x1xf32> to vector<64x1xf32>
    %c0_6 = arith.constant 0 : index
    %c0_7 = arith.constant 0 : index
    %6 = vector.load %arg3[%c0_6, %c0_7] : memref<64x64xf32, #tpu.memory_space<vmem>>, vector<64x64xf32>
    %c0_8 = arith.constant 0 : index
    %c0_9 = arith.constant 0 : index
    %c0_10 = arith.constant 0 : index
    %7 = vector.load %arg1[%c0_8, %c0_9, %c0_10] : memref<1x64x128xf32, #tpu.memory_space<vmem>>, vector<1x64x128xf32>
    %8 = vector.shape_cast %7 : vector<1x64x128xf32> to vector<64x128xf32>
    %cst = arith.constant dense<0.000000e+00> : vector<64xf32>
    %9 = vector.multi_reduction <add>, %8, %cst [1] : vector<64x128xf32> to vector<64xf32>
    %10 = vector.shape_cast %9 : vector<64xf32> to vector<64x1xf32>
    %11 = arith.mulf %8, %8 : vector<64x128xf32>
    %cst_11 = arith.constant dense<0.000000e+00> : vector<64xf32>
    %12 = vector.multi_reduction <add>, %11, %cst_11 [1] : vector<64x128xf32> to vector<64xf32>
    %13 = vector.shape_cast %12 : vector<64xf32> to vector<64x1xf32>
    %14 = tpu.concatenate %10, %13 in 1 : vector<64x1xf32>, vector<64x1xf32> -> vector<64x2xf32>
    %cst_12 = arith.constant dense<0.000000e+00> : vector<64x2xf32>
    %15 = tpu.matmul %6, %14, %cst_12 {dimension_numbers = #tpu.dot_dimension_numbers<[1], [0], [0], [1], [0, 0, 1, 1], [], []>} : vector<64x64xf32>, vector<64x2xf32>, vector<64x2xf32> -> vector<64x2xf32>
    %16 = vector.extract_strided_slice %15 {offsets = [0, 0], sizes = [64, 1], strides = [1, 1]} : vector<64x2xf32> to vector<64x1xf32>
    %17 = vector.extract_strided_slice %15 {offsets = [0, 1], sizes = [64, 1], strides = [1, 1]} : vector<64x2xf32> to vector<64x1xf32>
    %18 = arith.mulf %16, %16 : vector<64x1xf32>
    %19 = arith.subf %17, %18 : vector<64x1xf32>
    %cst_13 = arith.constant 9.99999974E-6 : f32
    %20 = vector.broadcast %cst_13 : f32 to vector<64x1xf32>
    %21 = arith.addf %19, %20 : vector<64x1xf32>
    %22 = math.rsqrt %21 : vector<64x1xf32>
    %23 = arith.mulf %22, %1 : vector<64x1xf32>
    %24 = arith.mulf %16, %23 : vector<64x1xf32>
    %25 = arith.subf %3, %24 : vector<64x1xf32>
    %26 = vector.broadcast %23 : vector<64x1xf32> to vector<64x128xf32>
    %27 = arith.mulf %8, %26 : vector<64x128xf32>
    %28 = vector.broadcast %25 : vector<64x1xf32> to vector<64x128xf32>
    %29 = arith.addf %27, %28 : vector<64x128xf32>
    %30 = arith.truncf %29 : vector<64x128xf32> to vector<64x128xbf16>
    %c0_14 = arith.constant 0 : index
    %c0_15 = arith.constant 0 : index
    %31 = vector.load %arg7[%c0_14, %c0_15] : memref<64x128xbf16, #tpu.memory_space<vmem>>, vector<64x128xbf16>
    tpu.vector_store %arg7[%c0_14, %c0_15], %30 {strides = array<i32>} : memref<64x128xbf16, #tpu.memory_space<vmem>>, vector<64x128xbf16>,
    %c0_16 = arith.constant 0 : index
    %c0_17 = arith.constant 0 : index
    %32 = vector.load %arg4[%c0_16, %c0_17] : memref<192x64xbf16, #tpu.memory_space<vmem>>, vector<192x64xbf16>
    %c0_18 = arith.constant 0 : index
    %c0_19 = arith.constant 0 : index
    %33 = vector.load %arg7[%c0_18, %c0_19] : memref<64x128xbf16, #tpu.memory_space<vmem>>, vector<64x128xbf16>
    %cst_20 = arith.constant dense<0.000000e+00> : vector<192x128xf32>
    %34 = tpu.matmul %32, %33, %cst_20 {dimension_numbers = #tpu.dot_dimension_numbers<[1], [0], [0], [1], [0, 0, 1, 1], [], []>} : vector<192x64xbf16>, vector<64x128xbf16>, vector<192x128xf32> -> vector<192x128xf32>
    %35 = arith.truncf %34 : vector<192x128xf32> to vector<192x128xbf16>
    %36 = vector.extract_strided_slice %35 {offsets = [0, 0], sizes = [32, 128], strides = [1, 1]} : vector<192x128xbf16> to vector<32x128xbf16>
    %37 = vector.extract_strided_slice %35 {offsets = [32, 0], sizes = [32, 128], strides = [1, 1]} : vector<192x128xbf16> to vector<32x128xbf16>
    %38 = vector.extract_strided_slice %35 {offsets = [64, 0], sizes = [32, 128], strides = [1, 1]} : vector<192x128xbf16> to vector<32x128xbf16>
    %cst_21 = arith.constant dense<0.000000e+00> : vector<128x128xf32>
    %39 = tpu.matmul %37, %36, %cst_21 {dimension_numbers = #tpu.dot_dimension_numbers<[0], [0], [1], [1], [0, 1, 1, 1], [], []>} : vector<32x128xbf16>, vector<32x128xbf16>, vector<128x128xf32> -> vector<128x128xf32>
    %cst_22 = arith.constant dense<0xFF800000> : vector<128xf32>
    %40 = vector.multi_reduction <maximumf>, %39, %cst_22 [0] : vector<128x128xf32> to vector<128xf32>
    %41 = vector.shape_cast %40 : vector<128xf32> to vector<1x128xf32>
    %42 = vector.broadcast %41 : vector<1x128xf32> to vector<128x128xf32>
    %43 = arith.subf %39, %42 : vector<128x128xf32>
    %44 = math.exp %43 : vector<128x128xf32>
    %cst_23 = arith.constant dense<0.000000e+00> : vector<128xf32>
    %45 = vector.multi_reduction <add>, %44, %cst_23 [0] : vector<128x128xf32> to vector<128xf32>
    %46 = vector.shape_cast %45 : vector<128xf32> to vector<1x128xf32>
    %47 = arith.truncf %44 : vector<128x128xf32> to vector<128x128xbf16>
    %cst_24 = arith.constant dense<0.000000e+00> : vector<32x128xf32>
    %48 = tpu.matmul %38, %47, %cst_24 {dimension_numbers = #tpu.dot_dimension_numbers<[1], [0], [0], [1], [0, 0, 1, 1], [], []>} : vector<32x128xbf16>, vector<128x128xbf16>, vector<32x128xf32> -> vector<32x128xf32>
    %49 = tpu.reciprocal %46 {approx = true} : vector<1x128xf32> -> vector<1x128xf32>
    %50 = vector.broadcast %49 : vector<1x128xf32> to vector<32x128xf32>
    %51 = arith.mulf %48, %50 : vector<32x128xf32>
    %52 = arith.truncf %51 : vector<32x128xf32> to vector<32x128xbf16>
    %c0_25 = arith.constant 0 : index
    %c0_26 = arith.constant 0 : index
    %53 = vector.load %arg8[%c0_25, %c0_26] : memref<64x128xbf16, #tpu.memory_space<vmem>>, vector<32x128xbf16>
    tpu.vector_store %arg8[%c0_25, %c0_26], %52 {strides = array<i32>} : memref<64x128xbf16, #tpu.memory_space<vmem>>, vector<32x128xbf16>,
    %54 = vector.extract_strided_slice %35 {offsets = [96, 0], sizes = [32, 128], strides = [1, 1]} : vector<192x128xbf16> to vector<32x128xbf16>
    %55 = vector.extract_strided_slice %35 {offsets = [128, 0], sizes = [32, 128], strides = [1, 1]} : vector<192x128xbf16> to vector<32x128xbf16>
    %56 = vector.extract_strided_slice %35 {offsets = [160, 0], sizes = [32, 128], strides = [1, 1]} : vector<192x128xbf16> to vector<32x128xbf16>
    %cst_27 = arith.constant dense<0.000000e+00> : vector<128x128xf32>
    %57 = tpu.matmul %55, %54, %cst_27 {dimension_numbers = #tpu.dot_dimension_numbers<[0], [0], [1], [1], [0, 1, 1, 1], [], []>} : vector<32x128xbf16>, vector<32x128xbf16>, vector<128x128xf32> -> vector<128x128xf32>
    %cst_28 = arith.constant dense<0xFF800000> : vector<128xf32>
    %58 = vector.multi_reduction <maximumf>, %57, %cst_28 [0] : vector<128x128xf32> to vector<128xf32>
    %59 = vector.shape_cast %58 : vector<128xf32> to vector<1x128xf32>
    %60 = vector.broadcast %59 : vector<1x128xf32> to vector<128x128xf32>
    %61 = arith.subf %57, %60 : vector<128x128xf32>
    %62 = math.exp %61 : vector<128x128xf32>
    %cst_29 = arith.constant dense<0.000000e+00> : vector<128xf32>
    %63 = vector.multi_reduction <add>, %62, %cst_29 [0] : vector<128x128xf32> to vector<128xf32>
    %64 = vector.shape_cast %63 : vector<128xf32> to vector<1x128xf32>
    %65 = arith.truncf %62 : vector<128x128xf32> to vector<128x128xbf16>
    %cst_30 = arith.constant dense<0.000000e+00> : vector<32x128xf32>
    %66 = tpu.matmul %56, %65, %cst_30 {dimension_numbers = #tpu.dot_dimension_numbers<[1], [0], [0], [1], [0, 0, 1, 1], [], []>} : vector<32x128xbf16>, vector<128x128xbf16>, vector<32x128xf32> -> vector<32x128xf32>
    %67 = tpu.reciprocal %64 {approx = true} : vector<1x128xf32> -> vector<1x128xf32>
    %68 = vector.broadcast %67 : vector<1x128xf32> to vector<32x128xf32>
    %69 = arith.mulf %66, %68 : vector<32x128xf32>
    %70 = arith.truncf %69 : vector<32x128xf32> to vector<32x128xbf16>
    %c32 = arith.constant 32 : index
    %c0_31 = arith.constant 0 : index
    %71 = vector.load %arg8[%c32, %c0_31] : memref<64x128xbf16, #tpu.memory_space<vmem>>, vector<32x128xbf16>
    tpu.vector_store %arg8[%c32, %c0_31], %70 {strides = array<i32>} : memref<64x128xbf16, #tpu.memory_space<vmem>>, vector<32x128xbf16>,
    %c0_32 = arith.constant 0 : index
    %c0_33 = arith.constant 0 : index
    %72 = vector.load %arg5[%c0_32, %c0_33] : memref<64x64xbf16, #tpu.memory_space<vmem>>, vector<64x64xbf16>
    %c0_34 = arith.constant 0 : index
    %c0_35 = arith.constant 0 : index
    %73 = vector.load %arg8[%c0_34, %c0_35] : memref<64x128xbf16, #tpu.memory_space<vmem>>, vector<64x128xbf16>
    %cst_36 = arith.constant dense<0.000000e+00> : vector<64x128xf32>
    %74 = tpu.matmul %72, %73, %cst_36 {dimension_numbers = #tpu.dot_dimension_numbers<[1], [0], [0], [1], [0, 0, 1, 1], [], []>} : vector<64x64xbf16>, vector<64x128xbf16>, vector<64x128xf32> -> vector<64x128xf32>
    %75 = vector.broadcast %5 : vector<64x1xf32> to vector<64x128xf32>
    %76 = arith.addf %74, %75 : vector<64x128xf32>
    %c0_37 = arith.constant 0 : index
    %c0_38 = arith.constant 0 : index
    %c0_39 = arith.constant 0 : index
    %77 = vector.load %arg1[%c0_37, %c0_38, %c0_39] : memref<1x64x128xf32, #tpu.memory_space<vmem>>, vector<1x64x128xf32>
    %78 = vector.shape_cast %77 : vector<1x64x128xf32> to vector<64x128xf32>
    %79 = arith.addf %76, %78 : vector<64x128xf32>
    %c0_40 = arith.constant 0 : index
    %c0_41 = arith.constant 0 : index
    %c0_42 = arith.constant 0 : index
    %80 = vector.load %arg6[%c0_40, %c0_41, %c0_42] : memref<1x64x128xf32, #tpu.memory_space<vmem>>, vector<1x64x128xf32>
    %81 = vector.shape_cast %80 : vector<1x64x128xf32> to vector<64x128xf32>
    %82 = vector.shape_cast %79 : vector<64x128xf32> to vector<1x64x128xf32>
    tpu.vector_store %arg6[%c0_40, %c0_41, %c0_42], %82 {strides = array<i32>} : memref<1x64x128xf32, #tpu.memory_space<vmem>>, vector<1x64x128xf32>,
    return
  }
  func.func @transform_0(%arg0: i32) -> (i32, i32, i32) {
    %c0_i32 = arith.constant 0 : i32
    %c0_i32_0 = arith.constant 0 : i32
    %c0_i32_1 = arith.constant 0 : i32
    return %arg0, %c0_i32, %c0_i32_0 : i32, i32, i32
  }
  func.func @transform_1(%arg0: i32) -> (i32, i32, i32) {
    %c0_i32 = arith.constant 0 : i32
    %c0_i32_0 = arith.constant 0 : i32
    %c0_i32_1 = arith.constant 0 : i32
    %c0_i32_2 = arith.constant 0 : i32
    return %c0_i32, %c0_i32_0, %c0_i32_1 : i32, i32, i32
  }
  func.func @transform_2(%arg0: i32) -> (i32, i32) {
    %c0_i32 = arith.constant 0 : i32
    %c0_i32_0 = arith.constant 0 : i32
    %c0_i32_1 = arith.constant 0 : i32
    return %c0_i32, %c0_i32_0 : i32, i32
  }
  func.func @transform_3(%arg0: i32) -> (i32, i32) {
    %c0_i32 = arith.constant 0 : i32
    %c0_i32_0 = arith.constant 0 : i32
    %c0_i32_1 = arith.constant 0 : i32
    return %c0_i32, %c0_i32_0 : i32, i32
  }
  func.func @transform_4(%arg0: i32) -> (i32, i32) {
    %c0_i32 = arith.constant 0 : i32
    %c0_i32_0 = arith.constant 0 : i32
    %c0_i32_1 = arith.constant 0 : i32
    return %c0_i32, %c0_i32_0 : i32, i32
  }
  func.func @transform_5(%arg0: i32) -> (i32, i32, i32) {
    %c0_i32 = arith.constant 0 : i32
    %c0_i32_0 = arith.constant 0 : i32
    %c0_i32_1 = arith.constant 0 : i32
    return %arg0, %c0_i32, %c0_i32_0 : i32, i32, i32
  }
}

</mosaic_0001>

<bundles_post_ra>
// kernel: tpu_custom_call.1
= control target key start
LH: loop header
LB: loop body
LE: loop exit
PB: predicated region body
PF: predicated region fallthrough
CT: control target
= control target key end

     0   :  { %10 = vsyncpa [#allocation5], 0  ;;  %s3233_s0 = inlined_call_operand.vmem [shape: f32[2,64,128], index: 0, kind: input, shape index: {}]   ;;  %s3234_s1 = inlined_call_operand.vmem [shape: f32[3,64,1], index: 1, kind: input, shape index: {}]   ;;  %s3235_s2 = inlined_call_operand.vmem [shape: f32[64,64], index: 2, kind: input, shape index: {}]   ;;  %s3236_s3 = inlined_call_operand.vmem [shape: bf16[192,64], index: 3, kind: input, shape index: {}]   ;;  %s3237_s4 = inlined_call_operand.vmem [shape: bf16[64,64], index: 4, kind: input, shape index: {}]   ;;  %s3238_s5 = inlined_call_operand.hbm [shape: f32[2,64,128], index: 5, kind: output, shape index: {}]  }
   0x1   :  { %12 = vsyncpa [#allocation5 + $0x1], 0  ;;  %s2582_s18 = smov 0   ;;  %s2584_s19 = smov 0  }
   0x2   :  { %s2586_s20 = smov 0   ;;  %s2588_s21 = smov 0  }
   0x3 LB: > { %s2603_s22 = sadd.s32 4294967295, %s2543_s21   ;;  %s1914_s23 = sadd.s32 4294967294, %s2543_s21   ;;  %s2543_s21 = sphi %s2588_s21, %s3244_s21   ;;  %s2539_s20 = sphi %s2586_s20, %s3243_s20   ;;  %s2535_s19 = sphi %s2584_s19, %s3242_s19   ;;  %s2531_s18 = sphi %s2582_s18, %s3241_s18  }
   0x4   : > { %s2607_s24 = sadd.s32 1, %s2543_s21   ;;  %s135_s25 = sadd.s32 1, %s2539_s20 }
   0x5   : > { %s132_s26 = ssub.s32 %s2543_s21, %s2607_s24  ;;  %p145_p0 = scmp.ne.s32.totalorder %s2539_s20, %s2535_s19 }
   0x6   : > { %p133_p1 = scmp.eq.s32.totalorder %s132_s26, 0  ;;  %p146_p2 = scmp.eq.s32.totalorder %s2603_s22, 1 }
   0x7   : > { %p151_p3 = scmp.ne.s32.totalorder %s2535_s19, %s2531_s18  ;;  %p152_p4 = scmp.eq.s32.totalorder %s1914_s23, 1 }
   0x8   : > { %s2618_s27 = scalar_select %p133_p1, %s2539_s20, %s135_s25  }
   0x9   : > { %p2620_p5 = por %p146_p2, %p145_p0  ;;  %p2624_p6 = por %p152_p4, %p151_p3 }
   0xa   : > { %p1917_p7 = scmp.ge.s32.totalorder %s2543_s21, 1  ;;  %p190_p8 = scmp.lt.s32.totalorder %s2543_s21, 3 }
   0xc   : > { %p191_p9 = pnand %p1917_p7, %p190_p8 }
   0xd   : > { %p218_p10 = scmp.lt.s32.totalorder (!%p191_p9), %s2603_s22, 1  ;;  %s2545_s11 = smov (!%p191_p9), 1  }
   0xe   : > { %194 = sbr.rel (%p191_p9) target bundleno = 1928 (0x788), region = 40  ;;  %s215_s23 = sand.u32 (!%p191_p9), 1, %s2535_s19  }
   0xf   : > { %s1918_s25 = sshll.u32 (!%p191_p9), %s215_s23, 6  ;;  %s2549_s12 = smov (!%p191_p9), [#allocation4]  }
  0x10   : > { %s3167_s26 = scalar_lea.vmem (!%p191_p9), [#allocation4], %s1918_s25  ;;  %s2487_s13 = sshll.u32 (!%p191_p9), %s2549_s12, 4  ;;  %s2488_s13 = int_to_ptr.vmem [resolvable:$false] %s2487_s13 }
  0x13   : > { %s219_s30 = scalar_select %p218_p10, %s2603_s22, 1  ;;  %v250_v16 = vld [vmem:[%s3235_s2] sm:$0xff]  ;;  %vm315_vm0 = vcmask 523264   ;;  %vm306_vm1 = vcmask 7168   ;;  %v251_v41 = vld [vmem:[%s3235_s2 + $0x8] sm:$0xff]  ;;  %v252_v42 = vld [vmem:[%s3235_s2 + $0x10] sm:$0xff] }
  0x14   : > { %2182 = vmatprep.mubr.msk.f32.mxu0 %vm315_vm0, %v250_v16  ;;  %v253_v43 = vld [vmem:[%s3235_s2 + $0x18] sm:$0xff]  ;;  %v254_v44 = vld [vmem:[%s3235_s2 + $0x20] sm:$0xff]  ;;  %v255_v45 = vld [vmem:[%s3235_s2 + $0x28] sm:$0xff]  ;;  %vm1034_vm2 = vcmask 261120  }
  0x15   : > { %s2022_s6 = sshll.u32 %s219_s30, 6  ;;  %v256_v46 = vld [vmem:[%s3235_s2 + $0x30] sm:$0xff]  ;;  %v257_v47 = vld [vmem:[%s3235_s2 + $0x38] sm:$0xff]  ;;  %v225_v16 = vld [vmem:[%s3234_s1 + $0x8] sm:$0xff]  ;;  %s2039_s30 = sshll.u32 %s2603_s22, 10 }
  0x16   : > { %s2635_s9 = scalar_lea.vmem %s3233_s0, %s2022_s6  ;;  %v230_v63 = vld [vmem:[%s3234_s1 + $0x30] sm:$0xff]  ;;  %s1852_s6 = sshll.u32 %s3167_s26, 4  ;;  %s3187_s6 = int_to_ptr.vmem [resolvable:$true] %s1852_s6 }
  0x17   : > { %v2638_v0 = vld [vmem:[%s2635_s9 + $0x38] sm:$0xff]  ;;  %v2641_v1 = vld [vmem:[%s2635_s9 + $0x30] sm:$0xff]  ;;  %v2648_v3 = vld [vmem:[%s2635_s9 + $0x28] sm:$0xff]  ;;  %s3185_s10 = scalar_lea.hbm %s3238_s5, %s2039_s30  ;;  %s3193_s22 = scalar_lea.sflag [#allocation5], %s215_s23 }
  0x18   : > { %280 = vadd.xlane.f32.xlu0 %v2638_v0  ;;  %278 = vadd.xlane.f32.xlu1 %v2641_v1  ;;  %v288_v2 = vmul.f32 %v2641_v1, %v2641_v1  ;;  %v2651_v4 = vld [vmem:[%s2635_s9 + $0x20] sm:$0xff]  ;;  %v289_v5 = vmul.f32 %v2638_v0, %v2638_v0  ;;  %v287_v6 = vmul.f32 %v2648_v3, %v2648_v3  ;;  %v2661_v8 = vld [vmem:[%s2635_s9 + $0x18] sm:$0xff]  ;;  %v2667_v10 = vld [vmem:[%s2635_s9 + $0x10] sm:$0xff]  ;;  %p2490_p0 = scmp.lt.s32.totalorder %s3187_s6, %s2488_s13 }
  0x19   : > { %v286_v7 = vmul.f32 %v2651_v4, %v2651_v4  ;;  %v285_v9 = vmul.f32 %v2661_v8, %v2661_v8  ;;  %v284_v11 = vmul.f32 %v2667_v10, %v2667_v10  ;;  %v2673_v12 = vld [vmem:[%s2635_s9 + $0x8] sm:$0xff]  ;;  %v2679_v14 = vld [vmem:[%s2635_s9] sm:$0xff] }
  0x1a   : > { %v283_v13 = vmul.f32 %v2673_v12, %v2673_v12  ;;  %v282_v15 = vmul.f32 %v2679_v14, %v2679_v14 }
  0x1c   : > { %302 = vadd.xlane.f32.xlu1 %v288_v2  ;;  %276 = vadd.xlane.f32.xlu0 %v2648_v3 }
  0x20   : > { %304 = vadd.xlane.f32.xlu0 %v289_v5  ;;  %300 = vadd.xlane.f32.xlu1 %v287_v6  ;;  %v228_v5 = vld [vmem:[%s3234_s1 + $0x20] sm:$0xff]  ;;  %v231_v6 = vld [vmem:[%s3234_s1 + $0x38] sm:$0xff] }
  0x24   : > { %274 = vadd.xlane.f32.xlu0 %v2651_v4  ;;  %298 = vadd.xlane.f32.xlu1 %v286_v7  ;;  %v226_v7 = vld [vmem:[%s3234_s1 + $0x10] sm:$0xff] }
  0x28   : > { %272 = vadd.xlane.f32.xlu0 %v2661_v8  ;;  %296 = vadd.xlane.f32.xlu1 %v285_v9  ;;  %v229_v9 = vld [vmem:[%s3234_s1 + $0x28] sm:$0xff] }
  0x2c   : > { %270 = vadd.xlane.f32.xlu0 %v2667_v10  ;;  %294 = vadd.xlane.f32.xlu1 %v284_v11  ;;  %v224_v11 = vld [vmem:[%s3234_s1] sm:$0xff] }
  0x30   : > { %268 = vadd.xlane.f32.xlu0 %v2673_v12  ;;  %292 = vadd.xlane.f32.xlu1 %v283_v13  ;;  %v2546_v13 = vmov 1  }
  0x31   : > { %2368 = vset.pattern.permute.xlu0 %v2546_v13  ;;  %2367 = vset.pattern.permute.xlu1 %v2546_v13 }
  0x34   : > { %266 = vadd.xlane.f32.xlu0 %v2679_v14  ;;  %290 = vadd.xlane.f32.xlu1 %v282_v15  ;;  %v227_v15 = vld [vmem:[%s3234_s1 + $0x18] sm:$0xff] }
  0xa1   : > { %v281_v17 = vpop.xlane.xlu0 %280  ;;  %v279_v18 = vpop.xlane.xlu1 %278 }
  0xa5   : > { %v303_v19 = vpop.xlane.xlu1 %302  ;;  %v277_v20 = vpop.xlane.xlu0 %276 }
  0xa6   : > { %v313_v24 = vsel %vm306_vm1, %v279_v18, %v303_v19 }
  0xa9   : > { %v305_v21 = vpop.xlane.xlu0 %304  ;;  %v301_v22 = vpop.xlane.xlu1 %300 }
  0xaa   : > { %v314_v23 = vsel %vm306_vm1, %v281_v17, %v305_v21  ;;  %v312_v27 = vsel %vm306_vm1, %v277_v20, %v301_v22 }
  0xab   : > { %2166 = vmatprep.subr.mxu0 %v314_v23 }
  0xac   : > { %2167 = vmatpush3.msra.mxu0 %v314_v23 }
  0xad   : > { %2168 = vmatprep.subr.mxu0 %v313_v24  ;;  %v275_v25 = vpop.xlane.xlu0 %274  ;;  %v299_v26 = vpop.xlane.xlu1 %298 }
  0xae   : > { %2169 = vmatpush3.msra.mxu0 %v313_v24  ;;  %v311_v28 = vsel %vm306_vm1, %v275_v25, %v299_v26 }
  0xaf   : > { %2170 = vmatprep.subr.mxu0 %v312_v27 }
  0xb0   : > { %2171 = vmatpush3.msra.mxu0 %v312_v27 }
  0xb1   : > { %2172 = vmatprep.subr.mxu0 %v311_v28  ;;  %v273_v29 = vpop.xlane.xlu0 %272  ;;  %v297_v30 = vpop.xlane.xlu1 %296 }
  0xb2   : > { %2173 = vmatpush3.msra.mxu0 %v311_v28  ;;  %v310_v31 = vsel %vm306_vm1, %v273_v29, %v297_v30 }
  0xb3   : > { %2174 = vmatprep.subr.mxu0 %v310_v31 }
  0xb4   : > { %2175 = vmatpush3.msra.mxu0 %v310_v31 }
  0xb5   : > { %v271_v32 = vpop.xlane.xlu0 %270  ;;  %v295_v33 = vpop.xlane.xlu1 %294 }
  0xb6   : > { %v309_v34 = vsel %vm306_vm1, %v271_v32, %v295_v33 }
  0xb7   : > { %2176 = vmatprep.subr.mxu0 %v309_v34 }
  0xb8   : > { %2177 = vmatpush3.msra.mxu0 %v309_v34 }
  0xb9   : > { %v269_v35 = vpop.xlane.xlu0 %268  ;;  %v293_v36 = vpop.xlane.xlu1 %292 }
  0xba   : > { %v308_v37 = vsel %vm306_vm1, %v269_v35, %v293_v36 }
  0xbb   : > { %2178 = vmatprep.subr.mxu0 %v308_v37 }
  0xbc   : > { %2179 = vmatpush3.msra.mxu0 %v308_v37 }
  0xbd   : > { %v267_v38 = vpop.xlane.xlu0 %266  ;;  %v291_v39 = vpop.xlane.xlu1 %290 }
  0xbe   : > { %v307_v40 = vsel %vm306_vm1, %v267_v38, %v291_v39 }
  0xbf   : > { %2180 = vmatprep.subr.mxu0 %v307_v40 }
  0xc0   : > { %2181 = vmatpush3.msra.mxu0 %v307_v40 }
  0xc1   : > { %2183 = vmatmul.mubr.msk.f32.vlgmr.msra.gmra.mxu0 %vm315_vm0, %v251_v41 }
  0xc2   : > { %2185 = vmatprep.mubr.msk.f32.mxu0 %vm315_vm0, %v252_v42 }
  0xc5   : > { %2186 = vmatmul.mubr.msk.f32.gmra.mxu0 %vm315_vm0, %v253_v43 }
  0xc6   : > { %2188 = vmatprep.mubr.msk.f32.mxu0 %vm315_vm0, %v254_v44 }
  0xc9   : > { %2189 = vmatmul.mubr.msk.f32.gmra.mxu0 %vm315_vm0, %v255_v45 }
  0xca   : > { %2191 = vmatprep.mubr.msk.f32.mxu0 %vm315_vm0, %v256_v46 }
  0xcd   : > { %2192 = vmatmul.mubr.msk.f32.gmra.mxu0 %vm315_vm0, %v257_v47 }
 0x181   : > { %v2725_v48 = vpop.f32.mrf.mxu0 }
 0x182   : > { %v446_v2 = vmul.f32 %v2725_v48, %v2725_v48 }
 0x183   : > { %v2727_v49 = vpop.f32.mrf.mxu0 }
 0x184   : > { %v445_v61 = vmul.f32 %v2727_v49, %v2727_v49 }
 0x185   : > { %v2729_v50 = vpop.f32.mrf.mxu0 }
 0x186   : > { %v448_v62 = vmul.f32 %v2729_v50, %v2729_v50 }
 0x187   : > { %v2731_v51 = vpop.f32.mrf.mxu0 }
 0x188   : > { %v447_v59 = vmul.f32 %v2731_v51, %v2731_v51 }
 0x189   : > { %v2733_v52 = vpop.f32.mrf.mxu0 }
 0x18a   : > { %v450_v60 = vmul.f32 %v2733_v52, %v2733_v52 }
 0x18b   : > { %v2735_v53 = vpop.f32.mrf.mxu0 }
 0x18c   : > { %v449_v58 = vmul.f32 %v2735_v53, %v2735_v53 }
 0x18d   : > { %v2737_v54 = vpop.f32.mrf.mxu0 }
 0x18e   : > { %v452_v55 = vmul.f32 %v2737_v54, %v2737_v54 }
 0x18f   : > { %v2741_v56 = vpop.f32.mrf.mxu0 }
 0x190   : > { %v451_v57 = vmul.f32 %v2741_v56, %v2741_v56  ;;  %475 = vrot.lane.b32.xlu1 %v452_v55, %s2545_s11 }
 0x192   : > { %473 = vrot.lane.b32.xlu0 %v451_v57, %s2545_s11 }
 0x194   : > { %469 = vrot.lane.b32.xlu1 %v449_v58, %s2545_s11 }
 0x196   : > { %465 = vrot.lane.b32.xlu0 %v447_v59, %s2545_s11 }
 0x198   : > { %471 = vrot.lane.b32.xlu1 %v450_v60, %s2545_s11 }
 0x19a   : > { %461 = vrot.lane.b32.xlu0 %v445_v61, %s2545_s11 }
 0x19c   : > { %467 = vrot.lane.b32.xlu1 %v448_v62, %s2545_s11 }
 0x19e   : > { %529 = vrot.lane.b32.xlu0 %v230_v63, %s2545_s11 }
 0x1a0   : > { %463 = vrot.lane.b32.xlu1 %v446_v2, %s2545_s11 }
 0x1a2   : > { %525 = vrot.lane.b32.xlu0 %v228_v5, %s2545_s11 }
 0x1a4   : > { %531 = vrot.lane.b32.xlu1 %v231_v6, %s2545_s11 }
 0x1a6   : > { %521 = vrot.lane.b32.xlu0 %v226_v7, %s2545_s11 }
 0x1a8   : > { %527 = vrot.lane.b32.xlu1 %v229_v9, %s2545_s11 }
 0x1aa   : > { %517 = vrot.lane.b32.xlu0 %v224_v11, %s2545_s11 }
 0x1ac   : > { %523 = vrot.lane.b32.xlu1 %v227_v15, %s2545_s11 }
 0x1b0   : > { %519 = vrot.lane.b32.xlu1 %v225_v16, %s2545_s11  ;;  %s2547_s11 = smov 127  }
 0x202   : > { %v476_v17 = vpop.permute.xlu1 %475 }
 0x203   : > { %v492_v18 = vsub.f32 %v2737_v54, %v476_v17 }
 0x204   : > { %v474_v19 = vpop.permute.xlu0 %473 }
 0x205   : > { %v500_v20 = vadd.f32 1e-05, %v492_v18  ;;  %v491_v21 = vsub.f32 %v2741_v56, %v474_v19  ;;  %v2548_v18 = vmov 0   ;;  %v1928_v19 = vld [vmem:[%s3234_s1 + $0x78] sm:$0xff] }
 0x206   : > { %v470_v22 = vpop.permute.xlu1 %469 }
 0x207   : > { %v499_v23 = vadd.f32 1e-05, %v491_v21  ;;  %v489_v24 = vsub.f32 %v2735_v53, %v470_v22  ;;  %2399 = vrsqrt.f32 %v500_v20 }
 0x208   : > { %v466_v25 = vpop.permute.xlu0 %465 }
 0x209   : > { %2401 = vrsqrt.f32 %v499_v23  ;;  %v497_v26 = vadd.f32 1e-05, %v489_v24  ;;  %v487_v27 = vsub.f32 %v2731_v51, %v466_v25  ;;  %v1925_v24 = vld [vmem:[%s3234_s1 + $0x60] sm:$0xff] }
 0x20a   : > { %v472_v28 = vpop.permute.xlu1 %471 }
 0x20b   : > { %2403 = vrsqrt.f32 %v497_v26  ;;  %v495_v29 = vadd.f32 1e-05, %v487_v27  ;;  %v490_v30 = vsub.f32 %v2733_v52, %v472_v28  ;;  %v1926_v27 = vld [vmem:[%s3234_s1 + $0x68] sm:$0xff] }
 0x20c   : > { %v462_v31 = vpop.permute.xlu0 %461 }
 0x20d   : > { %v498_v32 = vadd.f32 1e-05, %v490_v30  ;;  %v485_v33 = vsub.f32 %v2727_v49, %v462_v31  ;;  %2405 = vrsqrt.f32 %v495_v29 }
 0x20e   : > { %v468_v34 = vpop.permute.xlu1 %467 }
 0x20f   : > { %2407 = vrsqrt.f32 %v498_v32  ;;  %v493_v35 = vadd.f32 1e-05, %v485_v33  ;;  %v488_v36 = vsub.f32 %v2729_v50, %v468_v34 }
 0x210   : > { %v530_v37 = vpop.permute.xlu0 %529 }
 0x211   : > { %v496_v38 = vadd.f32 1e-05, %v488_v36  ;;  %2409 = vrsqrt.f32 %v493_v35 }
 0x212   : > { %v464_v39 = vpop.permute.xlu1 %463 }
 0x213   : > { %2411 = vrsqrt.f32 %v496_v38  ;;  %v486_v40 = vsub.f32 %v2725_v48, %v464_v39  ;;  %v1923_v38 = vld [vmem:[%s3234_s1 + $0x50] sm:$0xff] }
 0x214   : > { %v526_v41 = vpop.permute.xlu0 %525  ;;  %v2400_v42 = vpop.eup %2399 }
 0x215   : > { %v494_v43 = vadd.f32 1e-05, %v486_v40 }
 0x216   : > { %v2402_v44 = vpop.eup %2401  ;;  %v532_v45 = vpop.permute.xlu1 %531 }
 0x217   : > { %2413 = vrsqrt.f32 %v494_v43  ;;  %v547_v46 = vmul.f32 %v2402_v44, %v530_v37  ;;  %v548_v47 = vmul.f32 %v2400_v42, %v532_v45  ;;  %v1921_v37 = vld [vmem:[%s3234_s1 + $0x40] sm:$0xff] }
 0x218   : > { %v2404_v55 = vpop.eup %2403  ;;  %v522_v57 = vpop.permute.xlu0 %521  ;;  %v2379_v44 = vld [vmem:[%s3236_s3] sm:$0xff]  }
 0x219   : > { %571 = vrot.lane.b32.xlu1 %v548_v47, %s2547_s11  ;;  %569 = vrot.lane.b32.xlu0 %v547_v46, %s2547_s11  ;;  %v545_v60 = vmul.f32 %v2404_v55, %v526_v41 }
 0x21a   : > { %v528_v58 = vpop.permute.xlu1 %527  ;;  %v2406_v59 = vpop.eup %2405  ;;  %2202 = vmatprep.mubr.msk.bf16.mxu1 %vm315_vm0, %v2379_v44 }
 0x21b   : > { %v543_v5 = vmul.f32 %v2406_v59, %v522_v57 }
 0x21c   : > { %v2408_v61 = vpop.eup %2407  ;;  %v518_v7 = vpop.permute.xlu0 %517 }
 0x21d   : > { %v546_v62 = vmul.f32 %v2408_v61, %v528_v58  ;;  %565 = vrot.lane.b32.xlu0 %v545_v60, %s2547_s11 }
 0x21e   : > { %v524_v63 = vpop.permute.xlu1 %523  ;;  %v2410_v2 = vpop.eup %2409 }
 0x21f   : > { %567 = vrot.lane.b32.xlu1 %v546_v62, %s2547_s11  ;;  %v541_v15 = vmul.f32 %v2410_v2, %v518_v7 }
 0x220   : > { %v2412_v6 = vpop.eup %2411 }
 0x221   : > { %v544_v9 = vmul.f32 %v2412_v6, %v524_v63  ;;  %561 = vrot.lane.b32.xlu0 %v543_v5, %s2547_s11 }
 0x222   : > { %v520_v11 = vpop.permute.xlu1 %519 }
 0x223   : > { %563 = vrot.lane.b32.xlu1 %v544_v9, %s2547_s11 }
 0x224   : > { %v2414_v16 = vpop.eup %2413 }
 0x225   : > { %v542_v17 = vmul.f32 %v2414_v16, %v520_v11  ;;  %557 = vrot.lane.b32.xlu0 %v541_v15, %s2547_s11 }
 0x227   : > { %559 = vrot.lane.b32.xlu1 %v542_v17, %s2547_s11  ;;  %s2489_s11 = scalar_lea.vmem %s2488_s13, 2048 }
 0x229   : > { %606 = vperm.xlu0 %2368, %v543_v5  }
 0x22b   : > { %626 = vperm.xlu1 %2367, %v548_v47  }
 0x22d   : > { %622 = vperm.xlu0 %2368, %v547_v46  }
 0x22f   : > { %614 = vperm.xlu1 %2367, %v545_v60  }
 0x231   : > { %2370 = vset.pattern.permute.xlu0 %v2548_v18 }
 0x233   : > { %618 = vperm.xlu1 %2367, %v546_v62  }
 0x237   : > { %2369 = vset.pattern.permute.xlu1 %v2548_v18 }
 0x28b   : > { %v572_v20 = vpop.permute.xlu1 %571  ;;  %v570_v21 = vpop.permute.xlu0 %569 }
 0x28c   : > { %v588_v22 = vmul.f32 %v2737_v54, %v572_v20  ;;  %v1924_v54 = vld [vmem:[%s3234_s1 + $0x58] sm:$0xff]  ;;  %v587_v39 = vmul.f32 %v570_v21, %v2741_v56  ;;  %v1922_v56 = vld [vmem:[%s3234_s1 + $0x48] sm:$0xff] }
 0x28e   : > { %v596_v23 = vsub.f32 %v1928_v19, %v588_v22 }
 0x28f   : > { %v566_v25 = vpop.permute.xlu0 %565 }
 0x290   : > { %v585_v26 = vmul.f32 %v566_v25, %v2735_v53  ;;  %674 = vperm.xlu0 %2370, %v596_v23  }
 0x291   : > { %v568_v28 = vpop.permute.xlu1 %567 }
 0x292   : > { %v593_v29 = vsub.f32 %v1925_v24, %v585_v26  ;;  %v586_v30 = vmul.f32 %v2733_v52, %v568_v28 }
 0x293   : > { %v562_v31 = vpop.permute.xlu0 %561 }
 0x294   : > { %v594_v32 = vsub.f32 %v1926_v27, %v586_v30  ;;  %659 = vperm.xlu0 %2370, %v593_v29   ;;  %v583_v52 = vmul.f32 %v562_v31, %v2731_v51  ;;  %v2382_v30 = vld [vmem:[%s3236_s3 + $0x18] sm:$0xff]   ;;  %v2383_v31 = vld [vmem:[%s3236_s3 + $0x20] sm:$0xff]  }
 0x295   : > { %v564_v33 = vpop.permute.xlu1 %563 }
 0x296   : > { %v584_v34 = vmul.f32 %v2729_v50, %v564_v33  ;;  %664 = vperm.xlu1 %2369, %v594_v32   ;;  %v591_v40 = vsub.f32 %v1923_v38, %v583_v52  ;;  %v2384_v32 = vld [vmem:[%s3236_s3 + $0x28] sm:$0xff]   ;;  %v2386_v33 = vld [vmem:[%s3236_s3 + $0x38] sm:$0xff]   ;;  %v2389_v52 = vld [vmem:[%s3236_s3 + $0x50] sm:$0xff]  }
 0x297   : > { %v558_v53 = vpop.permute.xlu0 %557 }
 0x298   : > { %v592_v35 = vsub.f32 %v1924_v54, %v584_v34  ;;  %v581_v36 = vmul.f32 %v558_v53, %v2727_v49  ;;  %v1927_v49 = vld [vmem:[%s3234_s1 + $0x70] sm:$0xff]  ;;  %v2387_v34 = vld [vmem:[%s3236_s3 + $0x40] sm:$0xff]   ;;  %v2388_v53 = vld [vmem:[%s3236_s3 + $0x48] sm:$0xff]  }
 0x299   : > { %v595_v51 = vsub.f32 %v1927_v49, %v587_v39  ;;  %v560_v41 = vpop.permute.xlu1 %559  ;;  %v2385_v54 = vld [vmem:[%s3236_s3 + $0x30] sm:$0xff]   ;;  %v2390_v39 = vld [vmem:[%s3236_s3 + $0x58] sm:$0xff]  }
 0x29a   : > { %2371 = vset.pattern.permute.xlu1 %v2546_v13  ;;  %654 = vperm.xlu0 %2370, %v592_v35   ;;  %v589_v50 = vsub.f32 %v1921_v37, %v581_v36  ;;  %v582_v42 = vmul.f32 %v2725_v48, %v560_v41 }
 0x29b   : > { %610 = vperm.xlu1 %2371, %v544_v9  }
 0x29c   : > { %v590_v43 = vsub.f32 %v1922_v56, %v582_v42 }
 0x29e   : > { %639 = vperm.xlu0 %2370, %v589_v50  }
 0x29f   : > { %2372 = vset.pattern.permute.xlu1 %v2548_v18 }
 0x2a0   : > { %649 = vperm.xlu1 %2372, %v591_v40  }
 0x2a4   : > { %669 = vperm.xlu1 %2372, %v595_v51   ;;  %v607_v45 = vpop.permute.xlu0 %606 }
 0x2a5   : > { %v631_v6 = vmul.f32 %v607_v45, %v2667_v10 }
 0x2a8   : > { %2373 = vset.pattern.permute.xlu1 %v2546_v13  ;;  %v627_v13 = vpop.permute.xlu1 %626  ;;  %v623_v46 = vpop.permute.xlu0 %622 }
 0x2a9   : > { %598 = vperm.xlu1 %2373, %v541_v15   ;;  %v636_v16 = vmul.f32 %v627_v13, %v2638_v0 }
 0x2ac   : > { %v615_v47 = vpop.permute.xlu1 %614 }
 0x2ad   : > { %602 = vperm.xlu1 %2373, %v542_v17   ;;  %v633_v58 = vmul.f32 %v615_v47, %v2651_v4  ;;  %v635_v4 = vmul.f32 %v623_v46, %v2641_v1 }
 0x2b0   : > { %v619_v48 = vpop.permute.xlu1 %618 }
 0x2b1   : > { %2374 = vset.pattern.permute.xlu1 %v2548_v18  ;;  %v634_v59 = vmul.f32 %v619_v48, %v2648_v3 }
 0x2b2   : > { %644 = vperm.xlu1 %2374, %v590_v43  }
 0x30b   : > { %v675_v55 = vpop.permute.xlu0 %674 }
 0x30c   : > { %v684_v18 = vadd.f32 %v675_v55, %v636_v16  ;;  %v1935_v16 = vld [vmem:[%s3234_s1 + $0xb0] sm:$0xff] }
 0x30f   : > { %v660_v57 = vpop.permute.xlu0 %659 }
 0x310   : > { %v681_v61 = vadd.f32 %v660_v57, %v633_v58 }
 0x311   : > { %v665_v60 = vpop.permute.xlu1 %664 }
 0x312   : > { %v682_v62 = vadd.f32 %v665_v60, %v634_v59 }
 0x314   : > { %v2053_v63 = vpack.c.bf16 %v682_v62, %v681_v61 }
 0x315   : > { %v655_v7 = vpop.permute.xlu0 %654 }
 0x316   : > { %2081 = vst [vmem:[#allocation2 + $0x10] sm:$0xff] %v2053_v63   ;;  %v611_v2 = vpop.permute.xlu1 %610 }
 0x317   : > { %v632_v5 = vmul.f32 %v611_v2, %v2661_v8 }
 0x319   : > { %v680_v11 = vadd.f32 %v655_v7, %v632_v5  ;;  %v640_v24 = vpop.permute.xlu0 %639 }
 0x31b   : > { %v650_v9 = vpop.permute.xlu1 %649 }
 0x31c   : > { %v679_v15 = vadd.f32 %v650_v9, %v631_v6  ;;  %v1929_v9 = vld [vmem:[%s3234_s1 + $0x80] sm:$0xff] }
 0x31d   : > { %v2376_v0 = vld [vmem:[#allocation2 + $0x10] sm:$0xff]  }
 0x31e   : > { %v2048_v17 = vpack.c.bf16 %v680_v11, %v679_v15  ;;  %v1931_v11 = vld [vmem:[%s3234_s1 + $0x90] sm:$0xff]  ;;  %v1933_v15 = vld [vmem:[%s3234_s1 + $0xa0] sm:$0xff] }
 0x31f   : > { %v670_v3 = vpop.permute.xlu1 %669 }
 0x320   : > { %2080 = vst [vmem:[#allocation2 + $0x8] sm:$0xff] %v2048_v17   ;;  %v683_v19 = vadd.f32 %v670_v3, %v635_v4  ;;  %v1930_v4 = vld [vmem:[%s3234_s1 + $0x88] sm:$0xff]  ;;  %v1932_v17 = vld [vmem:[%s3234_s1 + $0x98] sm:$0xff] }
 0x321   : > { %v1934_v3 = vld [vmem:[%s3234_s1 + $0xa8] sm:$0xff] }
 0x322   : > { %v2058_v20 = vpack.c.bf16 %v684_v18, %v683_v19  ;;  %v1936_v18 = vld [vmem:[%s3234_s1 + $0xb8] sm:$0xff] }
 0x324   : > { %2082 = vst [vmem:[#allocation2 + $0x18] sm:$0xff] %v2058_v20   ;;  %v599_v21 = vpop.permute.xlu1 %598 }
 0x325   : > { %v629_v8 = vmul.f32 %v599_v21, %v2679_v14  ;;  %v2381_v14 = vld [vmem:[%s3236_s3 + $0x10] sm:$0xff]  }
 0x327   : > { %v677_v26 = vadd.f32 %v640_v24, %v629_v8  ;;  %v2377_v28 = vld [vmem:[#allocation2 + $0x8] sm:$0xff]  }
 0x328   : > { %v603_v22 = vpop.permute.xlu1 %602 }
 0x329   : > { %v630_v23 = vmul.f32 %v603_v22, %v2673_v12  ;;  %v2380_v12 = vld [vmem:[%s3236_s3 + $0x8] sm:$0xff]  }
 0x32b   : > { %v2375_v10 = vld [vmem:[#allocation2 + $0x18] sm:$0xff]  }
 0x32c   : > { %2194 = vmatprep.subr.bf16.mxu1 %v2375_v10 }
 0x32d   : > { %v645_v25 = vpop.permute.xlu1 %644  ;;  %2195 = vmatpush3.bf16.msra.mxu1 %v2375_v10 }
 0x32e   : > { %v678_v1 = vadd.f32 %v645_v25, %v630_v23  ;;  %2196 = vmatprep.subr.bf16.mxu1 %v2376_v0 }
 0x330   : > { %v2043_v27 = vpack.c.bf16 %v678_v1, %v677_v26 }
 0x331   : > { %2197 = vmatpush3.bf16.msra.mxu1 %v2376_v0 }
 0x332   : > { %2044 = vst [vmem:[#allocation2] sm:$0xff] %v2043_v27   ;;  %2198 = vmatprep.subr.bf16.mxu1 %v2377_v28 }
 0x335   : > { %2199 = vmatpush3.bf16.msra.mxu1 %v2377_v28 }
 0x339   : > { %v2378_v29 = vld [vmem:[#allocation2] sm:$0xff]  }
 0x33a   : > { %2200 = vmatprep.subr.bf16.mxu1 %v2378_v29 }
 0x33b   : > { %2201 = vmatpush3.bf16.msra.mxu1 %v2378_v29 }
 0x33e   : > { %2203 = vmatmul.mubr.msk.bf16.vlgmr.msra.gmra.mxu1 %vm315_vm0, %v2380_v12 }
 0x33f   : > { %2206 = vmatprep.mubr.msk.bf16.mxu1 %vm315_vm0, %v2381_v14 }
 0x346   : > { %2207 = vmatmul.mubr.msk.bf16.gmra.mxu1 %vm315_vm0, %v2382_v30 }
 0x347   : > { %2210 = vmatprep.mubr.msk.bf16.mxu1 %vm315_vm0, %v2383_v31 }
 0x34e   : > { %2211 = vmatmul.mubr.msk.bf16.gmra.mxu1 %vm315_vm0, %v2384_v32 }
 0x34f   : > { %2214 = vmatprep.mubr.msk.bf16.mxu1 %vm315_vm0, %v2385_v54 }
 0x356   : > { %2215 = vmatmul.mubr.msk.bf16.gmra.mxu1 %vm315_vm0, %v2386_v33 }
 0x357   : > { %2218 = vmatprep.mubr.msk.bf16.mxu1 %vm315_vm0, %v2387_v34 }
 0x35e   : > { %2219 = vmatmul.mubr.msk.bf16.gmra.mxu1 %vm315_vm0, %v2388_v53 }
 0x35f   : > { %2222 = vmatprep.mubr.msk.bf16.mxu1 %vm315_vm0, %v2389_v52 }
 0x366   : > { %2223 = vmatmul.mubr.msk.bf16.gmra.mxu1 %vm315_vm0, %v2390_v39 }
 0x3fe   : > { %v2204_v35 = vpop.f32.mrf.mxu1 }
 0x400   : > { %v911_v36 = vpop.f32.mrf.mxu1 }
 0x402   : > { %v2205_v37 = vpop.f32.mrf.mxu1 }
 0x403   : > { %v1007_v38 = vpack.c.bf16 %v2205_v37, %v2204_v35 }
 0x404   : > { %v914_v50 = vpop.f32.mrf.mxu1 }
 0x405   : > { %v1006_v40 = vpack.c.bf16 %v914_v50, %v911_v36  ;;  %2226 = vmatprep.subr.bf16.mxu0 %v1007_v38 }
 0x406   : > { %v2208_v49 = vpop.f32.mrf.mxu1  ;;  %2227 = vmatpush3.bf16.msra.mxu0 %v1007_v38 }
 0x407   : > { %2228 = vmatprep.subr.bf16.mxu0 %v1006_v40 }
 0x408   : > { %v927_v51 = vpop.f32.mrf.mxu1 }
 0x40a   : > { %v2209_v41 = vpop.f32.mrf.mxu1  ;;  %2229 = vmatpush3.bf16.msra.mxu0 %v1006_v40 }
 0x40b   : > { %v1009_v45 = vpack.c.bf16 %v2209_v41, %v2208_v49 }
 0x40c   : > { %v930_v42 = vpop.f32.mrf.mxu1 }
 0x40d   : > { %v1008_v56 = vpack.c.bf16 %v930_v42, %v927_v51 }
 0x40e   : > { %v2897_v43 = vpop.f32.mrf.mxu1 }
 0x40f   : > { %1018 = vxpose.xlu0.c.b16.start [1/2] (short) %v1008_v56, 128 }
 0x410   : > { %v943_v44 = vpop.f32.mrf.mxu1 }
 0x412   : > { %v2899_v13 = vpop.f32.mrf.mxu1 }
 0x413   : > { %v1011_v46 = vpack.c.bf16 %v2899_v13, %v2897_v43  ;;  %1019 = vxpose.xlu0.c.b16.end [2/2] (short) %v1009_v45, 128  ;;  %v2395_v43 = vld [vmem:[%s3237_s4] sm:$0xff]  }
 0x414   : > { %v946_v47 = vpop.f32.mrf.mxu1 }
 0x415   : > { %v1010_v55 = vpack.c.bf16 %v946_v47, %v943_v44 }
 0x416   : > { %v2216_v48 = vpop.f32.mrf.mxu1 }
 0x418   : > { %v959_v57 = vpop.f32.mrf.mxu1 }
 0x41a   : > { %v2217_v58 = vpop.f32.mrf.mxu1 }
 0x41b   : > { %v1013_v59 = vpack.c.bf16 %v2217_v58, %v2216_v48 }
 0x41c   : > { %v962_v60 = vpop.f32.mrf.mxu1 }
 0x41d   : > { %v1012_v61 = vpack.c.bf16 %v962_v60, %v959_v57  ;;  %2266 = vmatprep.subr.bf16.mxu1 %v1013_v59 }
 0x41e   : > { %v2220_v62 = vpop.f32.mrf.mxu1  ;;  %2267 = vmatpush3.bf16.msra.mxu1 %v1013_v59 }
 0x41f   : > { %2268 = vmatprep.subr.bf16.mxu1 %v1012_v61 }
 0x420   : > { %v975_v63 = vpop.f32.mrf.mxu1 }
 0x422   : > { %v2221_v2 = vpop.f32.mrf.mxu1  ;;  %2269 = vmatpush3.bf16.msra.mxu1 %v1012_v61 }
 0x423   : > { %v1015_v7 = vpack.c.bf16 %v2221_v2, %v2220_v62 }
 0x424   : > { %v978_v5 = vpop.f32.mrf.mxu1 }
 0x425   : > { %v1014_v6 = vpack.c.bf16 %v978_v5, %v975_v63 }
 0x426   : > { %v2943_v14 = vpop.f32.mrf.mxu1 }
 0x427   : > { %1328 = vxpose.xlu1.c.b16.start [1/2] (short) %v1014_v6, 128 }
 0x428   : > { %v2945_v30 = vpop.f32.mrf.mxu1 }
 0x42a   : > { %v2947_v31 = vpop.f32.mrf.mxu1 }
 0x42b   : > { %1329 = vxpose.xlu1.c.b16.end [2/2] (short) %v1015_v7, 128  ;;  %v1017_v32 = vpack.c.bf16 %v2947_v31, %v2943_v14 }
 0x42c   : > { %v2967_v40 = vpop.f32.mrf.mxu1 }
 0x434   : > { %1655 = vperm.xlu0 %2370, %v1929_v9  }
 0x438   : > { %1665 = vperm.xlu0 %2370, %v1931_v11  }
 0x43c   : > { %1675 = vperm.xlu0 %2370, %v1933_v15  }
 0x440   : > { %1685 = vperm.xlu0 %2370, %v1935_v16  }
 0x447   : > { %1660 = vperm.xlu1 %2374, %v1930_v4  }
 0x44b   : > { %1670 = vperm.xlu1 %2374, %v1932_v17  }
 0x44f   : > { %1680 = vperm.xlu1 %2374, %v1934_v3  }
 0x453   : > { %1690 = vperm.xlu1 %2374, %v1936_v18  }
 0x471   : > { %v1026_v19 = vpop.trf.xlu0 }
 0x472   : > { %2230 = vmatprep.mubr.msk.bf16.mxu0 %vm1034_vm2, %v1026_v19 }
 0x475   : > { %v1027_v20 = vpop.trf.xlu0 }
 0x476   : > { %2231 = vmatmul.mubr.msk.bf16.vlgmr.msra.gmra.mxu0 %vm1034_vm2, %v1027_v20 }
 0x479   : > { %v1028_v21 = vpop.trf.xlu0 }
 0x47a   : > { %2234 = vmatprep.mubr.msk.bf16.mxu0 %vm1034_vm2, %v1028_v21 }
 0x47d   : > { %v1029_v22 = vpop.trf.xlu0 }
 0x47e   : > { %2235 = vmatmul.mubr.msk.bf16.gmra.mxu0 %vm1034_vm2, %v1029_v22 }
 0x481   : > { %v1030_v8 = vpop.trf.xlu0 }
 0x482   : > { %2238 = vmatprep.mubr.msk.bf16.mxu0 %vm1034_vm2, %v1030_v8 }
 0x485   : > { %v1031_v10 = vpop.trf.xlu0 }
 0x486   : > { %2239 = vmatmul.mubr.msk.bf16.gmra.mxu0 %vm1034_vm2, %v1031_v10 }
 0x489   : > { %v1032_v23 = vpop.trf.xlu0  ;;  %v1336_v24 = vpop.trf.xlu1 }
 0x48a   : > { %2242 = vmatprep.mubr.msk.bf16.mxu0 %vm1034_vm2, %v1032_v23  ;;  %2270 = vmatprep.mubr.msk.bf16.mxu1 %vm1034_vm2, %v1336_v24 }
 0x48d   : > { %v1033_v25 = vpop.trf.xlu0  ;;  %v1337_v0 = vpop.trf.xlu1 }
 0x48e   : > { %2243 = vmatmul.mubr.msk.bf16.gmra.mxu0 %vm1034_vm2, %v1033_v25  ;;  %2271 = vmatmul.mubr.msk.bf16.vlgmr.msra.gmra.mxu1 %vm1034_vm2, %v1337_v0 }
 0x48f   : > { %2262 = vmatprep.mubr.bf16.mxu0 %v1010_v55 }
 0x491   : > { %v1338_v26 = vpop.trf.xlu1 }
 0x492   : > { %2274 = vmatprep.mubr.msk.bf16.mxu1 %vm1034_vm2, %v1338_v26 }
 0x495   : > { %v1339_v1 = vpop.trf.xlu1 }
 0x496   : > { %2275 = vmatmul.mubr.msk.bf16.gmra.mxu1 %vm1034_vm2, %v1339_v1 }
 0x499   : > { %v1340_v27 = vpop.trf.xlu1 }
 0x49a   : > { %2278 = vmatprep.mubr.msk.bf16.mxu1 %vm1034_vm2, %v1340_v27 }
 0x49d   : > { %v1341_v28 = vpop.trf.xlu1 }
 0x49e   : > { %2279 = vmatmul.mubr.msk.bf16.gmra.mxu1 %vm1034_vm2, %v1341_v28 }
 0x4a1   : > { %v1342_v29 = vpop.trf.xlu1 }
 0x4a2   : > { %2282 = vmatprep.mubr.msk.bf16.mxu1 %vm1034_vm2, %v1342_v29 }
 0x4a5   : > { %v1343_v12 = vpop.trf.xlu1 }
 0x4a6   : > { %2283 = vmatmul.mubr.msk.bf16.gmra.mxu1 %vm1034_vm2, %v1343_v12 }
 0x4a7   : > { %2314 = vmatprep.mubr.msk.bf16.mxu1 %vm315_vm0, %v2395_v43 }
 0x536   : > { %v2951_v54 = vpop.f32.mrf.mxu0 }
 0x538   : > { %v1093_v33 = vpop.f32.mrf.mxu0 }
 0x53a   : > { %v2233_v34 = vpop.f32.mrf.mxu0 }
 0x53c   : > { %v1096_v53 = vpop.f32.mrf.mxu0 }
 0x53e   : > { %v2953_v35 = vpop.f32.mrf.mxu0 }
 0x53f   : > { %v1158_v45 = vmax.f32 %v2951_v54, %v2953_v35 }
 0x540   : > { %v2955_v36 = vpop.f32.mrf.mxu0 }
 0x541   : > { %v1156_v47 = vmax.f32 %v1093_v33, %v2955_v36 }
 0x542   : > { %v2957_v37 = vpop.f32.mrf.mxu0 }
 0x543   : > { %v1159_v42 = vmax.f32 %v2233_v34, %v2957_v37 }
 0x544   : > { %v2959_v52 = vpop.f32.mrf.mxu0 }
 0x545   : > { %v1157_v55 = vmax.f32 %v1096_v53, %v2959_v52 }
 0x546   : > { %v2961_v38 = vpop.f32.mrf.mxu0 }
 0x547   : > { %v1162_v59 = vmax.f32 %v1158_v45, %v2961_v38 }
 0x548   : > { %v2963_v50 = vpop.f32.mrf.mxu0 }
 0x549   : > { %v1160_v60 = vmax.f32 %v1156_v47, %v2963_v50 }
 0x54a   : > { %v2965_v39 = vpop.f32.mrf.mxu0 }
 0x54b   : > { %v1163_v48 = vmax.f32 %v1159_v42, %v2965_v39 }
 0x54c   : > { %v2969_v49 = vpop.f32.mrf.mxu0 }
 0x54d   : > { %v1161_v61 = vmax.f32 %v1157_v55, %v2969_v49 }
 0x54e   : > { %v2971_v51 = vpop.f32.mrf.mxu0  ;;  %v2973_v41 = vpop.f32.mrf.mxu1 }
 0x54f   : > { %v1166_v5 = vmax.f32 %v1162_v59, %v2971_v51 }
 0x550   : > { %v2976_v56 = vpop.f32.mrf.mxu0  ;;  %v2978_v44 = vpop.f32.mrf.mxu1 }
 0x551   : > { %v1164_v6 = vmax.f32 %v1160_v60, %v2976_v56 }
 0x552   : > { %v2985_v57 = vpop.f32.mrf.mxu0  ;;  %v2987_v58 = vpop.f32.mrf.mxu1 }
 0x553   : > { %v1167_v62 = vmax.f32 %v1163_v48, %v2985_v57 }
 0x554   : > { %v2993_v63 = vpop.f32.mrf.mxu0  ;;  %v2995_v2 = vpop.f32.mrf.mxu1 }
 0x555   : > { %v1165_v7 = vmax.f32 %v1161_v61, %v2993_v63  ;;  %v1169_v11 = vmax.f32 %v1166_v5, %v1167_v62 }
 0x556   : > { %v3000_v9 = vpop.f32.mrf.mxu1 }
 0x557   : > { %v1168_v15 = vmax.f32 %v1164_v6, %v1165_v7  ;;  %v1467_v12 = vmax.f32 %v2973_v41, %v3000_v9 }
 0x558   : > { %v3002_v16 = vpop.f32.mrf.mxu1 }
 0x559   : > { %v1170_v4 = vmax.f32 %v1168_v15, %v1169_v11  ;;  %v1465_v42 = vmax.f32 %v2978_v44, %v3002_v16 }
 0x55a   : > { %v3004_v17 = vpop.f32.mrf.mxu1 }
 0x55b   : > { %v1171_v3 = vrot.slane %v1170_v4, 4 }
 0x55c   : > { %v3006_v18 = vpop.f32.mrf.mxu1 }
 0x55d   : > { %v1172_v19 = vmax.f32 %v1170_v4, %v1171_v3  ;;  %v1466_v48 = vmax.f32 %v2995_v2, %v3006_v18 }
 0x55e   : > { %v3008_v20 = vpop.f32.mrf.mxu1 }
 0x55f   : > { %v1173_v21 = vrot.slane %v1172_v19, 2  ;;  %v1471_v59 = vmax.f32 %v1467_v12, %v3008_v20 }
 0x560   : > { %v3010_v22 = vpop.f32.mrf.mxu1 }
 0x561   : > { %v1174_v8 = vmax.f32 %v1172_v19, %v1173_v21  ;;  %v1469_v60 = vmax.f32 %v1465_v42, %v3010_v22 }
 0x562   : > { %v3012_v10 = vpop.f32.mrf.mxu1 }
 0x563   : > { %v1175_v23 = vrot.slane %v1174_v8, 1 }
 0x564   : > { %v3014_v24 = vpop.f32.mrf.mxu1 }
 0x565   : > { %v3016_v25 = vmax.f32 %v1174_v8, %v1175_v23  ;;  %v1470_v6 = vmax.f32 %v1466_v48, %v3014_v24 }
 0x566   : > { %v3018_v0 = vpop.f32.mrf.mxu1 }
 0x567   : > { %v1177_v26 = vsub.f32 %v1093_v33, %v3016_v25  ;;  %v1178_v1 = vsub.f32 %v1096_v53, %v3016_v25  ;;  %v1179_v27 = vsub.f32 %v2951_v54, %v3016_v25  ;;  %v1180_v28 = vsub.f32 %v2233_v34, %v3016_v25 }
 0x568   : > { %v3025_v29 = vpop.f32.mrf.mxu1  ;;  %v1181_v45 = vsub.f32 %v2955_v36, %v3016_v25  ;;  %v1468_v53 = vmax.f32 %v2987_v58, %v3004_v17  ;;  %v1182_v62 = vsub.f32 %v2959_v52, %v3016_v25  ;;  %v1183_v5 = vsub.f32 %v2953_v35, %v3016_v25 }
 0x569   : > { %v1193_v47 = vmul.f32 1.442695, %v1177_v26  ;;  %v1195_v33 = vmul.f32 1.442695, %v1178_v1  ;;  %v1197_v54 = vmul.f32 1.442695, %v1179_v27  ;;  %v1184_v7 = vsub.f32 %v2957_v37, %v3016_v25 }
 0x56a   : > { %v3035_v55 = vpop.f32.mrf.mxu1  ;;  %v1199_v34 = vmul.f32 1.442695, %v1180_v28  ;;  %v1472_v61 = vmax.f32 %v1468_v53, %v3012_v10  ;;  %v1201_v11 = vmul.f32 1.442695, %v1181_v45  ;;  %v1475_v15 = vmax.f32 %v1471_v59, %v3018_v0 }
 0x56b   : > { %2415 = vpow2.f32 %v1193_v47  ;;  %v1473_v4 = vmax.f32 %v1469_v60, %v3025_v29  ;;  %v1185_v35 = vsub.f32 %v2963_v50, %v3016_v25  ;;  %v1189_v19 = vsub.f32 %v2976_v56, %v3016_v25 }
 0x56c   : > { %v3042_v36 = vpop.f32.mrf.mxu1  ;;  %2417 = vpow2.f32 %v1195_v33  ;;  %v1476_v3 = vmax.f32 %v1472_v61, %v3035_v55  ;;  %v1203_v21 = vmul.f32 1.442695, %v1182_v62  ;;  %v1205_v23 = vmul.f32 1.442695, %v1183_v5 }
 0x56d   : > { %2419 = vpow2.f32 %v1197_v54  ;;  %v1474_v52 = vmax.f32 %v1470_v6, %v3042_v36  ;;  %v1191_v26 = vsub.f32 %v2971_v51, %v3016_v25  ;;  %v1207_v1 = vmul.f32 1.442695, %v1184_v7 }
 0x56e   : > { %2421 = vpow2.f32 %v1199_v34  ;;  %v1478_v8 = vmax.f32 %v1475_v15, %v1476_v3  ;;  %v1192_v28 = vsub.f32 %v2985_v57, %v3016_v25  ;;  %v1190_v12 = vsub.f32 %v2993_v63, %v3016_v25 }
 0x56f   : > { %v1477_v37 = vmax.f32 %v1473_v4, %v1474_v52  ;;  %2423 = vpow2.f32 %v1201_v11  ;;  %v1209_v50 = vmul.f32 1.442695, %v1185_v35  ;;  %v1186_v56 = vsub.f32 %v2969_v49, %v3016_v25 }
 0x570   : > { %2425 = vpow2.f32 %v1203_v21  ;;  %v1217_v42 = vmul.f32 1.442695, %v1189_v19  ;;  %v1187_v47 = vsub.f32 %v2961_v38, %v3016_v25  ;;  %v1221_v51 = vmul.f32 1.442695, %v1191_v26 }
 0x571   : > { %v1479_v27 = vmax.f32 %v1477_v37, %v1478_v8  ;;  %2427 = vpow2.f32 %v1205_v23  ;;  %v1223_v53 = vmul.f32 1.442695, %v1192_v28  ;;  %v1188_v57 = vsub.f32 %v2965_v39, %v3016_v25 }
 0x572   : > { %2429 = vpow2.f32 %v1207_v1  ;;  %v1219_v63 = vmul.f32 1.442695, %v1190_v12  ;;  %v1211_v34 = vmul.f32 1.442695, %v1186_v56  ;;  %v1213_v59 = vmul.f32 1.442695, %v1187_v47 }
 0x573   : > { %v1480_v45 = vrot.slane %v1479_v27, 4  ;;  %2431 = vpow2.f32 %v1209_v50  ;;  %v1215_v6 = vmul.f32 1.442695, %v1188_v57 }
 0x574   : > { %2433 = vpow2.f32 %v1217_v42 }
 0x575   : > { %v1481_v33 = vmax.f32 %v1479_v27, %v1480_v45  ;;  %2435 = vpow2.f32 %v1221_v51 }
 0x576   : > { %2437 = vpow2.f32 %v1223_v53 }
 0x577   : > { %v1482_v49 = vrot.slane %v1481_v33, 2  ;;  %2439 = vpow2.f32 %v1219_v63 }
 0x578   : > { %v2416_v54 = vpop.eup %2415  ;;  %2441 = vpow2.f32 %v1211_v34 }
 0x579   : > { %v2418_v48 = vpop.eup %2417  ;;  %v1483_v38 = vmax.f32 %v1481_v33, %v1482_v49  ;;  %2443 = vpow2.f32 %v1213_v59 }
 0x57a   : > { %v2420_v60 = vpop.eup %2419  ;;  %v1225_v61 = vadd.f32 %v2418_v48, %v2416_v54  ;;  %v3071_v62 = vpack.c.bf16 %v2418_v48, %v2416_v54  ;;  %2445 = vpow2.f32 %v1215_v6 }
 0x57b   : > { %v2422_v5 = vpop.eup %2421  ;;  %v1484_v25 = vrot.slane %v1483_v38, 1 }
 0x57c   : > { %v1226_v39 = vadd.f32 %v2420_v60, %v1225_v61  ;;  %v3073_v7 = vpack.c.bf16 %v2422_v5, %v2420_v60  ;;  %v3077_v4 = vpop.eup %2423 }
 0x57d   : > { %v3075_v15 = vmax.f32 %v1483_v38, %v1484_v25  ;;  %v3086_v21 = vpop.eup %2425 }
 0x57e   : > { %v1227_v11 = vadd.f32 %v2422_v5, %v1226_v39  ;;  %v3090_v37 = vpop.eup %2427 }
 0x57f   : > { %v1486_v52 = vsub.f32 %v2978_v44, %v3075_v15  ;;  %v1487_v35 = vsub.f32 %v2995_v2, %v3075_v15  ;;  %v1488_v19 = vsub.f32 %v2973_v41, %v3075_v15  ;;  %v1489_v8 = vsub.f32 %v2987_v58, %v3075_v15  ;;  %v3093_v26 = vpop.eup %2429 }
 0x580   : > { %v1228_v3 = vadd.f32 %v3077_v4, %v1227_v11  ;;  %v2432_v1 = vpop.eup %2431  ;;  %v1490_v41 = vsub.f32 %v3002_v16, %v3075_v15  ;;  %v1491_v45 = vsub.f32 %v3006_v18, %v3075_v15  ;;  %v1492_v53 = vsub.f32 %v3000_v9, %v3075_v15 }
 0x581   : > { %v1502_v27 = vmul.f32 1.442695, %v1486_v52  ;;  %v1504_v28 = vmul.f32 1.442695, %v1487_v35  ;;  %v1506_v2 = vmul.f32 1.442695, %v1488_v19  ;;  %v2434_v12 = vpop.eup %2433  ;;  %v1493_v34 = vsub.f32 %v3004_v17, %v3075_v15 }
 0x582   : > { %v1229_v23 = vadd.f32 %v3086_v21, %v1228_v3  ;;  %v1508_v50 = vmul.f32 1.442695, %v1489_v8  ;;  %v2436_v56 = vpop.eup %2435  ;;  %v1510_v57 = vmul.f32 1.442695, %v1490_v41  ;;  %v1512_v49 = vmul.f32 1.442695, %v1491_v45 }
 0x583   : > { %2447 = vpow2.f32 %v1502_v27  ;;  %v2438_v42 = vpop.eup %2437  ;;  %v1494_v60 = vsub.f32 %v3010_v22, %v3075_v15  ;;  %v1495_v9 = vsub.f32 %v3014_v24, %v3075_v15  ;;  %v1514_v61 = vmul.f32 1.442695, %v1492_v53 }
 0x584   : > { %v1230_v44 = vadd.f32 %v3090_v37, %v1229_v23  ;;  %2449 = vpow2.f32 %v1504_v28  ;;  %v2440_v47 = vpop.eup %2439  ;;  %v1253_v16 = vpack.c.bf16 %v2438_v42, %v2436_v56  ;;  %v1500_v5 = vsub.f32 %v3018_v0, %v3075_v15 }
 0x585   : > { %2451 = vpow2.f32 %v1506_v2  ;;  %v2442_v33 = vpop.eup %2441  ;;  %v1252_v48 = vpack.c.bf16 %v2440_v47, %v2434_v12  ;;  %v1516_v17 = vmul.f32 1.442695, %v1493_v34  ;;  %v1501_v39 = vsub.f32 %v3035_v55, %v3075_v15 }
 0x586   : > { %v1231_v58 = vadd.f32 %v3093_v26, %v1230_v44  ;;  %2453 = vpow2.f32 %v1508_v50  ;;  %v2444_v54 = vpop.eup %2443  ;;  %2246 = vmatprep.subr.bf16.mxu0 %v1253_v16  ;;  %v1496_v22 = vsub.f32 %v3008_v20, %v3075_v15  ;;  %v1518_v11 = vmul.f32 1.442695, %v1494_v60 }
 0x587   : > { %v2446_v18 = vpop.eup %2445  ;;  %2247 = vmatpush3.bf16.msra.mxu0 %v1253_v16  ;;  %2455 = vpow2.f32 %v1510_v57  ;;  %v1497_v24 = vsub.f32 %v3012_v10, %v3075_v15  ;;  %v1520_v3 = vmul.f32 1.442695, %v1495_v9  ;;  %v1498_v0 = vsub.f32 %v3025_v29, %v3075_v15 }
 0x588   : > { %v1232_v51 = vadd.f32 %v2432_v1, %v1231_v58  ;;  %2248 = vmatprep.subr.bf16.mxu0 %v1252_v48  ;;  %2457 = vpow2.f32 %v1512_v49  ;;  %v1251_v6 = vpack.c.bf16 %v2446_v18, %v2444_v54  ;;  %v1499_v35 = vsub.f32 %v3042_v36, %v3075_v15 }
 0x589   : > { %2459 = vpow2.f32 %v1514_v61  ;;  %v1530_v55 = vmul.f32 1.442695, %v1500_v5  ;;  %v1250_v8 = vpack.c.bf16 %v2442_v33, %v2432_v1  ;;  %v1532_v20 = vmul.f32 1.442695, %v1501_v39 }
 0x58a   : > { %v1233_v63 = vadd.f32 %v2442_v33, %v1232_v51  ;;  %2461 = vpow2.f32 %v1516_v17  ;;  %v1522_v44 = vmul.f32 1.442695, %v1496_v22  ;;  %v1524_v28 = vmul.f32 1.442695, %v1497_v24 }
 0x58b   : > { %2249 = vmatpush3.bf16.msra.mxu0 %v1252_v48  ;;  %2463 = vpow2.f32 %v1518_v11  ;;  %v1526_v41 = vmul.f32 1.442695, %v1498_v0  ;;  %v1528_v36 = vmul.f32 1.442695, %v1499_v35  ;;  %v1249_v50 = vpack.c.bf16 %v3093_v26, %v3090_v37 }
 0x58c   : > { %v1234_v59 = vadd.f32 %v2444_v54, %v1233_v63  ;;  %2250 = vmatprep.subr.bf16.mxu0 %v1251_v6  ;;  %2465 = vpow2.f32 %v1520_v3 }
 0x58d   : > { %2467 = vpow2.f32 %v1530_v55 }
 0x58e   : > { %v1235_v38 = vadd.f32 %v2446_v18, %v1234_v59  ;;  %2469 = vpow2.f32 %v1532_v20 }
 0x58f   : > { %2251 = vmatpush3.bf16.msra.mxu0 %v1251_v6  ;;  %2471 = vpow2.f32 %v1522_v44 }
 0x590   : > { %v1236_v25 = vadd.f32 %v2434_v12, %v1235_v38  ;;  %v2448_v19 = vpop.eup %2447  ;;  %2252 = vmatprep.subr.bf16.mxu0 %v1250_v8  ;;  %2473 = vpow2.f32 %v1524_v28  ;;  %v1016_v38 = vpack.c.bf16 %v2967_v40, %v2945_v30 }
 0x591   : > { %v2450_v23 = vpop.eup %2449  ;;  %2475 = vpow2.f32 %v1526_v41 }
 0x592   : > { %v1237_v52 = vadd.f32 %v2440_v47, %v1236_v25  ;;  %v2452_v10 = vpop.eup %2451  ;;  %v1534_v2 = vadd.f32 %v2450_v23, %v2448_v19  ;;  %v3121_v12 = vpack.c.bf16 %v2450_v23, %v2448_v19  ;;  %2477 = vpow2.f32 %v1528_v36 }
 0x593   : > { %v2454_v29 = vpop.eup %2453  ;;  %2253 = vmatpush3.bf16.msra.mxu0 %v1250_v8 }
 0x594   : > { %v1238_v27 = vadd.f32 %v2436_v56, %v1237_v52  ;;  %v1535_v1 = vadd.f32 %v2452_v10, %v1534_v2  ;;  %v1556_v56 = vpack.c.bf16 %v2454_v29, %v2452_v10  ;;  %2254 = vmatprep.subr.bf16.mxu0 %v1249_v50  ;;  %v2456_v45 = vpop.eup %2455 }
 0x595   : > { %v2458_v51 = vpop.eup %2457 }
 0x596   : > { %v3123_v15 = vadd.f32 %v2438_v42, %v1238_v27  ;;  %v1536_v58 = vadd.f32 %v2454_v29, %v1535_v1  ;;  %v1248_v42 = vpack.c.bf16 %v3086_v21, %v3077_v4  ;;  %v2460_v53 = vpop.eup %2459  ;;  %v1557_v30 = vpack.c.bf16 %v2458_v51, %v2456_v45 }
 0x597   : > { %2255 = vmatpush3.bf16.msra.mxu0 %v1249_v50  ;;  %v2462_v26 = vpop.eup %2461 }
 0x598   : > { %v1537_v47 = vadd.f32 %v2456_v45, %v1536_v58  ;;  %2256 = vmatprep.subr.bf16.mxu0 %v1248_v42  ;;  %v2464_v57 = vpop.eup %2463  ;;  %v1558_v22 = vpack.c.bf16 %v2462_v26, %v2460_v53  ;;  %v1240_v13 = vrot.slane %v3123_v15, 4 }
 0x599   : > { %v2466_v63 = vpop.eup %2465 }
 0x59a   : > { %v1538_v33 = vadd.f32 %v2458_v51, %v1537_v47  ;;  %v2468_v54 = vpop.eup %2467 }
 0x59b   : > { %2257 = vmatpush3.bf16.msra.mxu0 %v1248_v42  ;;  %v2470_v49 = vpop.eup %2469 }
 0x59c   : > { %v1539_v37 = vadd.f32 %v2460_v53, %v1538_v33  ;;  %2258 = vmatprep.subr.bf16.mxu0 %v3073_v7  ;;  %v2472_v48 = vpop.eup %2471  ;;  %v1562_v60 = vpack.c.bf16 %v2470_v49, %v2468_v54 }
 0x59d   : > { %v2474_v21 = vpop.eup %2473 }
 0x59e   : > { %v1540_v16 = vadd.f32 %v2462_v26, %v1539_v37  ;;  %v2476_v18 = vpop.eup %2475  ;;  %v1560_v39 = vpack.c.bf16 %v2474_v21, %v2472_v48  ;;  %v2396_v26 = vld [vmem:[%s3237_s4 + $0x8] sm:$0xff]  }
 0x59f   : > { %2259 = vmatpush3.bf16.msra.mxu0 %v3073_v7  ;;  %v2478_v9 = vpop.eup %2477 }
 0x5a0   : > { %v1541_v34 = vadd.f32 %v2464_v57, %v1540_v16  ;;  %2260 = vmatprep.subr.bf16.mxu0 %v3071_v62  ;;  %v1561_v7 = vpack.c.bf16 %v2478_v9, %v2476_v18  ;;  %v2398_v16 = vld [vmem:[%s3237_s4 + $0x18] sm:$0xff]  }
 0x5a2   : > { %v1542_v4 = vadd.f32 %v2466_v63, %v1541_v34 }
 0x5a3   : > { %2261 = vmatpush3.bf16.msra.mxu0 %v3071_v62  ;;  %v1559_v62 = vpack.c.bf16 %v2466_v63, %v2464_v57  ;;  %v2397_v57 = vld [vmem:[%s3237_s4 + $0x10] sm:$0xff]   ;;  %v1656_v63 = vpop.permute.xlu0 %1655 }
 0x5a4   : > { %v1543_v59 = vadd.f32 %v2472_v48, %v1542_v4  ;;  %2286 = vmatprep.subr.bf16.mxu0 %v1562_v60  ;;  %v1816_v4 = vld [vmem:[%s2635_s9 + $0x10] sm:$0xff] }
 0x5a6   : > { %v1544_v61 = vadd.f32 %v2474_v21, %v1543_v59  ;;  %2263 = vmatmul.mubr.bf16.vlgmr.msra.gmra.mxu0 %v1011_v46  ;;  %v1241_v46 = vadd.f32 %v1240_v13, %v3123_v15  ;;  %v1820_v13 = vld [vmem:[%s2635_s9 + $0x30] sm:$0xff] }
 0x5a7   : > { %2287 = vmatpush3.bf16.msra.mxu0 %v1562_v60  ;;  %2302 = vmatprep.mubr.bf16.mxu0 %v1016_v38  ;;  %v1666_v34 = vpop.permute.xlu0 %1665  ;;  %v1814_v60 = vld [vmem:[%s2635_s9] sm:$0xff] }
 0x5a8   : > { %v1545_v5 = vadd.f32 %v2476_v18, %v1544_v61  ;;  %2288 = vmatprep.subr.bf16.mxu0 %v1561_v7  ;;  %v1242_v40 = vrot.slane %v1241_v46, 2 }
 0x5aa   : > { %v1546_v17 = vadd.f32 %v2478_v9, %v1545_v5  ;;  %v1243_v11 = vadd.f32 %v1242_v40, %v1241_v46  ;;  %v1817_v5 = vld [vmem:[%s2635_s9 + $0x18] sm:$0xff] }
 0x5ab   : > { %2289 = vmatpush3.bf16.msra.mxu0 %v1561_v7  ;;  %v1676_v18 = vpop.permute.xlu0 %1675 }
 0x5ac   : > { %v1547_v6 = vadd.f32 %v2468_v54, %v1546_v17  ;;  %2290 = vmatprep.subr.bf16.mxu0 %v1560_v39  ;;  %v1244_v24 = vrot.slane %v1243_v11, 1  ;;  %v1661_v54 = vpop.permute.xlu1 %1660 }
 0x5ae   : > { %v1548_v25 = vadd.f32 %v2470_v49, %v1547_v6  ;;  %v1245_v3 = vadd.f32 %v1244_v24, %v1243_v11  ;;  %v1818_v24 = vld [vmem:[%s2635_s9 + $0x20] sm:$0xff] }
 0x5af   : > { %2291 = vmatpush3.bf16.msra.mxu0 %v1560_v39 }
 0x5b0   : > { %2292 = vmatprep.subr.bf16.mxu0 %v1559_v62  ;;  %2479 = vrcp.f32 %v1245_v3  ;;  %v1549_v52 = vrot.slane %v1548_v25, 4  ;;  %v1671_v49 = vpop.permute.xlu1 %1670 }
 0x5b2   : > { %v1550_v14 = vadd.f32 %v1549_v52, %v1548_v25  ;;  %v1815_v25 = vld [vmem:[%s2635_s9 + $0x8] sm:$0xff] }
 0x5b3   : > { %2293 = vmatpush3.bf16.msra.mxu0 %v1559_v62 }
 0x5b4   : > { %2294 = vmatprep.subr.bf16.mxu0 %v1558_v22  ;;  %v1551_v20 = vrot.slane %v1550_v14, 2  ;;  %v1681_v6 = vpop.permute.xlu1 %1680 }
 0x5b6   : > { %v1552_v28 = vadd.f32 %v1551_v20, %v1550_v14  ;;  %v1821_v14 = vld [vmem:[%s2635_s9 + $0x38] sm:$0xff] }
 0x5b7   : > { %2295 = vmatpush3.bf16.msra.mxu0 %v1558_v22 }
 0x5b8   : > { %2296 = vmatprep.subr.bf16.mxu0 %v1557_v30  ;;  %v1553_v2 = vrot.slane %v1552_v28, 1 }
 0x5bb   : > { %2297 = vmatpush3.bf16.msra.mxu0 %v1557_v30  ;;  %v1686_v30 = vpop.permute.xlu0 %1685 }
 0x5bc   : > { %2298 = vmatprep.subr.bf16.mxu0 %v1556_v56 }
 0x5bd   : > { %v2480_v31 = vpop.eup %2479 }
 0x5bf   : > { %2299 = vmatpush3.bf16.msra.mxu0 %v1556_v56 }
 0x5c0   : > { %2300 = vmatprep.subr.bf16.mxu0 %v3121_v12 }
 0x5c3   : > { %2301 = vmatpush3.bf16.msra.mxu0 %v3121_v12  ;;  %v1554_v12 = vadd.f32 %v1553_v2, %v1552_v28 }
 0x5c5   : > { %2481 = vrcp.f32 %v1554_v12 }
 0x5c6   : > { %2303 = vmatmul.mubr.bf16.vlgmr.msra.gmra.mxu0 %v1017_v32 }
 0x5d2   : > { %v2482_v36 = vpop.eup %2481 }
 0x666   : > { %v2264_v0 = vpop.f32.mrf.mxu0 }
 0x667   : > { %v1306_v55 = vmul.f32 %v2480_v31, %v2264_v0  ;;  %v1691_v0 = vpop.permute.xlu1 %1690 }
 0x668   : > { %v1288_v35 = vpop.f32.mrf.mxu0 }
 0x669   : > { %v1304_v23 = vmul.f32 %v2480_v31, %v1288_v35 }
 0x66a   : > { %v2265_v32 = vpop.f32.mrf.mxu0 }
 0x66b   : > { %v1307_v19 = vmul.f32 %v2480_v31, %v2265_v32 }
 0x66c   : > { %v1291_v8 = vpop.f32.mrf.mxu0 }
 0x66d   : > { %v2068_v44 = vpack.c.bf16 %v1307_v19, %v1306_v55  ;;  %v1305_v27 = vmul.f32 %v2480_v31, %v1291_v8  ;;  %v1819_v19 = vld [vmem:[%s2635_s9 + $0x28] sm:$0xff]  ;;  %s2483_s9 = scalar_lea.vmem %s3187_s6, 1024 }
 0x66e   : > { %p2484_p11 = scmp.ne.s32.totalorder %s3187_s6, %s2483_s9  ;;  %p2491_p1 = scmp.lt.s32.totalorder %s2489_s11, %s2483_s9 }
 0x66f   : > { %2083 = vst [vmem:[#allocation3 + $0x8] sm:$0xff] %v2068_v44   ;;  %v2063_v10 = vpack.c.bf16 %v1305_v27, %v1304_v23 }
 0x670   : > { %p2485_p12 = pnand %p2484_p11, %p2620_p5  ;;  %p2492_p2 = por %p2491_p1, %p2490_p0 }
 0x671   : > { %2064 = vst [vmem:[#allocation3] sm:$0xff] %v2063_v10  }
 0x672   : > { %p2486_p13 = pneg %p2485_p12 }
 0x674   : > { %p2493_p3 = pnand %p2492_p2, %p2486_p13 }
 0x676   : > { %v2393_v53 = vld [vmem:[#allocation3 + $0x8] sm:$0xff]  }
 0x678   : > { %v2394_v37 = vld [vmem:[#allocation3] sm:$0xff]  }
 0x686   : > { %v2304_v29 = vpop.f32.mrf.mxu0 }
 0x687   : > { %v1615_v1 = vmul.f32 %v2482_v36, %v2304_v29 }
 0x688   : > { %v1597_v41 = vpop.f32.mrf.mxu0 }
 0x689   : > { %v1613_v58 = vmul.f32 %v2482_v36, %v1597_v41 }
 0x68a   : > { %v2305_v15 = vpop.f32.mrf.mxu0 }
 0x68b   : > { %v1616_v50 = vmul.f32 %v2482_v36, %v2305_v15 }
 0x68c   : > { %v1600_v56 = vpop.f32.mrf.mxu0 }
 0x68d   : > { %v2078_v45 = vpack.c.bf16 %v1616_v50, %v1615_v1  ;;  %v1614_v47 = vmul.f32 %v2482_v36, %v1600_v56 }
 0x68f   : > { %2085 = vst [vmem:[#allocation3 + $0x18] sm:$0xff] %v2078_v45   ;;  %v2073_v42 = vpack.c.bf16 %v1614_v47, %v1613_v58 }
 0x691   : > { %2084 = vst [vmem:[#allocation3 + $0x10] sm:$0xff] %v2073_v42  }
 0x696   : > { %v2391_v51 = vld [vmem:[#allocation3 + $0x18] sm:$0xff]  }
 0x697   : > { %2306 = vmatprep.subr.bf16.mxu1 %v2391_v51 }
 0x698   : > { %v2392_v33 = vld [vmem:[#allocation3 + $0x10] sm:$0xff]   ;;  %2307 = vmatpush3.bf16.msra.mxu1 %v2391_v51 }
 0x699   : > { %2308 = vmatprep.subr.bf16.mxu1 %v2392_v33 }
 0x69c   : > { %2309 = vmatpush3.bf16.msra.mxu1 %v2392_v33 }
 0x69d   : > { %2310 = vmatprep.subr.bf16.mxu1 %v2393_v53 }
 0x6a0   : > { %2311 = vmatpush3.bf16.msra.mxu1 %v2393_v53 }
 0x6a1   : > { %2312 = vmatprep.subr.bf16.mxu1 %v2394_v37 }
 0x6a4   : > { %2313 = vmatpush3.bf16.msra.mxu1 %v2394_v37 }
 0x6a7   : > { %2315 = vmatmul.mubr.msk.bf16.vlgmr.msra.gmra.mxu1 %vm315_vm0, %v2396_v26 }
 0x6a8   : > { %2318 = vmatprep.mubr.msk.bf16.mxu1 %vm315_vm0, %v2397_v57 }
 0x6af   : > { %2319 = vmatmul.mubr.msk.bf16.gmra.mxu1 %vm315_vm0, %v2398_v16 }
 0x767   : > { %v2316_v48 = vpop.f32.mrf.mxu1 }
 0x768   : > { %v1792_v21 = vadd.f32 %v2316_v48, %v1666_v34 }
 0x769   : > { %v1783_v59 = vpop.f32.mrf.mxu1 }
 0x76a   : > { %v1824_v9 = vadd.f32 %v1816_v4, %v1792_v21  ;;  %v1784_v61 = vadd.f32 %v1783_v59, %v1656_v63 }
 0x76b   : > { %v2317_v38 = vpop.f32.mrf.mxu1 }
 0x76c   : > { %1832 = vst [vmem:[%s3167_s26 + $0x10] sm:$0xff] %v1824_v9  ;;  %v1822_v7 = vadd.f32 %v1814_v60, %v1784_v61  ;;  %v1795_v17 = vadd.f32 %v2317_v38, %v1671_v49 }
 0x76d   : > { %v1786_v39 = vpop.f32.mrf.mxu1 }
 0x76e   : > { %1830 = vst [vmem:[%s3167_s26] sm:$0xff] %v1822_v7  ;;  %v1825_v62 = vadd.f32 %v1817_v5, %v1795_v17  ;;  %v1787_v22 = vadd.f32 %v1786_v39, %v1661_v54 }
 0x76f   : > { %v2320_v43 = vpop.f32.mrf.mxu1 }
 0x770   : > { %1833 = vst [vmem:[%s3167_s26 + $0x18] sm:$0xff] %v1825_v62  ;;  %v1823_v46 = vadd.f32 %v1815_v25, %v1787_v22  ;;  %v1808_v40 = vadd.f32 %v2320_v43, %v1686_v30 }
 0x771   : > { %v1799_v11 = vpop.f32.mrf.mxu1 }
 0x772   : > { %1831 = vst [vmem:[%s3167_s26 + $0x8] sm:$0xff] %v1823_v46  ;;  %v1828_v3 = vadd.f32 %v1820_v13, %v1808_v40  ;;  %v1800_v52 = vadd.f32 %v1799_v11, %v1676_v18 }
 0x773   : > { %v2321_v35 = vpop.f32.mrf.mxu1 }
 0x774   : > { %1836 = vst [vmem:[%s3167_s26 + $0x30] sm:$0xff] %v1828_v3  ;;  %v1826_v31 = vadd.f32 %v1818_v24, %v1800_v52  ;;  %v1811_v32 = vadd.f32 %v2321_v35, %v1691_v0 }
 0x775   : > { %v1802_v55 = vpop.f32.mrf.mxu1 }
 0x776   : > { %1834 = vst [vmem:[%s3167_s26 + $0x20] sm:$0xff] %v1826_v31  ;;  %v1829_v8 = vadd.f32 %v1821_v14, %v1811_v32  ;;  %v1803_v20 = vadd.f32 %v1802_v55, %v1681_v6 }
 0x778   : > { %1837 = vst [vmem:[%s3167_s26 + $0x38] sm:$0xff] %v1829_v8  ;;  %v1827_v23 = vadd.f32 %v1819_v19, %v1803_v20 }
 0x77a   : > { %1835 = vst [vmem:[%s3167_s26 + $0x28] sm:$0xff] %v1827_v23 }
 0x77b   : > { %2496 = shalt.err (!%p2493_p3)
}
 0x77c   : > { %s2497_s14 = scalar_lea.hbm %s3185_s10, 1024  ;;  %s2501_s17 = scalar_lea.hbm %s3238_s5, 2048 }
 0x77d   : > { %p2498_p4 = scmp.ne.s32.totalorder %s3185_s10, %s2497_s14  ;;  %p2502_p9 = scmp.lt.s32.totalorder %s3185_s10, %s3238_s5 }
 0x77e   : > { %p2503_p10 = scmp.lt.s32.totalorder %s2501_s17, %s2497_s14 }
 0x77f   : > { %p2499_p7 = pnand %p2498_p4, %p2620_p5 }
 0x780   : > { %p2504_p11 = por %p2503_p10, %p2502_p9 }
 0x781   : > { %p2500_p8 = pneg %p2499_p7 }
 0x783   : > { %p2505_p12 = pnand %p2504_p11, %p2500_p8 }
 0x785   : > { %2508 = shalt.err (!%p2505_p12)
}
 0x786   : > { %s2550_s26 = smov 128   ;;  %s2551_s30 = smov 8  }
 0x787   : > { %2322 = dma.vmem_to_hbm [thread:$0]  (%p2620_p5), %s3187_s6, 1024, %s3185_s10, %s3193_s22, %s2550_s26, %s2550_s26, %s2551_s30  }
 0x788 PF: > { %p2328_p13 = scmp.ge.s32.totalorder %s2543_s21, 2  ;;  %s1867_s7 = sand.u32 1, %s2531_s18  }
 0x789   : > { %s1868_s8 = scalar_lea.sflag [#allocation5], %s1867_s7 }
 0x78a   : > { %p2325_p0 = pnand %p2328_p13, %p2624_p6 }
 0x78c   : > { %p2326_p1 = pneg %p2325_p0 }
 0x78e   : > { %2526 = dma.done.wait (%p2326_p1), %s1868_s8, 1024  }
 0x78f   : > { %2528 = vsyncadd (%p2326_p1), %s1868_s8, 4294966272  ;;  %p15_p2 = scmp.ge.s32.totalorder %s2607_s24, 4   ;;  %s3241_s18 = smov %s2535_s19 }
 0x790   : > { %s3242_s19 = smov %s2539_s20  ;;  %s3243_s20 = smov %s2618_s27 }
 0x791   : > { %s3244_s21 = smov %s2607_s24  ;;  %17 = sbr.rel (!%p15_p2) target bundleno = 3 (0x3), region = 77 }
 0x796   :  { %1873 = vsyncpa [#allocation5], 1 }
 0x797   :  { %1875 = vsyncpa [#allocation5 + $0x1], 1 }

</bundles_post_ra>
